<compile_context>
chip_gen: v5e
topology: v5e:2x2
jax: 0.10.0
libtpu: 0.0.40
codegen_flags: <defaults>
</compile_context>

<pallas_src>
import functools

import jax
import jax.numpy as jnp
from jax.experimental import pallas as pl
from jax.experimental.pallas import tpu as pltpu

_LANE = 128
_SUBLANE = 8


def _round_up(x, m):
    return ((x + m - 1) // m) * m


def _conv_relu_kernel(x_ref, w_ref, b_ref, o_ref, *, KH, KW, stride, Wq, tm):
    """One (batch, Cout-tile, row-tile) step of direct conv + bias + ReLU.

    x_ref: (1, s*s, Rows_p, Cin_p)  phase-split, flattened, zero-padded image
    w_ref: (KH*KW, Cin_p, tile_n)   weight slice for this Cout tile
    b_ref: (1, tile_n)              bias slice
    o_ref: (1, tm, tile_n)          lane-dense output row tile
    """
    tn = o_ref.shape[-1]
    base = pl.multiple_of(pl.program_id(2) * tm, _SUBLANE)

    acc = jnp.zeros((tm, tn), jnp.float32)
    # Static unrolled reduction over the KH*KW taps.  Each tap is a contiguous
    # row-range slice of the flattened image (no relayout) contracted over the
    # lane-dense Cin_p on the MXU with f32 accumulation.
    for kh in range(KH):
        for kw in range(KW):
            ph = (kh % stride) * stride + (kw % stride)       # static phase idx
            off = (kh // stride) * Wq + (kw // stride)        # static row offset
            a = x_ref[0, ph, pl.ds(base + off, tm), :]
            acc = acc + jnp.dot(a, w_ref[kh * KW + kw],
                                preferred_element_type=jnp.float32)

    acc = acc + b_ref[...]                    # (1, tn) broadcast on VPU slack
    o_ref[0] = jnp.maximum(acc, 0.0).astype(o_ref.dtype)


def basic_conv2d(x_nchw, weight, bias, *, stride=1, padding=1,
                 compute_dtype=jnp.float32, tile_m=512, tile_n=None):
    """Conv2d(Cin, Cout, KHxKW, stride, padding) + ReLU  (PyTorch BasicConv2d).

    x_nchw : (N, Cin, H, W)  float32
    weight : (Cout, Cin, KH, KW)
    bias   : (Cout,)
    returns: (N, Cout, Ho, Wo)  NCHW, matching PyTorch.

    compute_dtype=jnp.bfloat16 is the fast path (f32 accumulation is kept).
    """
    N, Cin, H, W = x_nchw.shape
    Cout, _, KH, KW = weight.shape
    s = stride
    Ho = (H + 2 * padding - KH) // s + 1
    Wo = (W + 2 * padding - KW) // s + 1

    # ---- lane-dense channel padding -----------------------------------------
    Cin_p = _round_up(Cin, _LANE)
    if tile_n is None:
        tile_n = 256 if Cout > _LANE else _LANE     # fill v6e/v7x 256-wide MXU
    Cout_p = _round_up(Cout, tile_n)

    # ---- activation: NHWC, spatial zero-pad, Cin pad, space-to-depth --------
    x = jnp.transpose(x_nchw, (0, 2, 3, 1))                         # NHWC
    Hp, Wp = H + 2 * padding, W + 2 * padding
    Hp2, Wp2 = _round_up(Hp, s), _round_up(Wp, s)
    x = jnp.pad(x, ((0, 0),
                    (padding, Hp2 - H - padding),
                    (padding, Wp2 - W - padding),
                    (0, Cin_p - Cin)))
    Hq, Wq = Hp2 // s, Wp2 // s
    # (N, Hq, s, Wq, s, C) -> (N, s, s, Hq, Wq, C): stride phases become a
    # leading axis, so every in-kernel tap is a unit-stride contiguous slab.
    x = x.reshape(N, Hq, s, Wq, s, Cin_p).transpose(0, 2, 4, 1, 3, 5)
    x = x.reshape(N, s * s, Hq * Wq, Cin_p)

    # ---- flattened-row tiling ------------------------------------------------
    M = Ho * Wq                         # Wq-wide output rows; cols >= Wo = junk
    tm = _round_up(M, _SUBLANE) if M <= tile_m else _round_up(tile_m, _SUBLANE)
    M_p = _round_up(M, tm)
    halo = ((KH - 1) // s) * Wq + (KW - 1) // s
    Rows_p = _round_up(max(M_p + halo, Hq * Wq), _SUBLANE)
    x = jnp.pad(x, ((0, 0), (0, 0), (0, Rows_p - Hq * Wq), (0, 0)))
    x = x.astype(compute_dtype)

    # ---- weight / bias (zero-padded so extra K rows / N cols contribute 0) --
    w = jnp.transpose(weight, (2, 3, 1, 0)).reshape(KH * KW, Cin, Cout)
    w = jnp.pad(w, ((0, 0), (0, Cin_p - Cin), (0, Cout_p - Cout)))
    w = w.astype(compute_dtype)
    b = jnp.pad(bias, (0, Cout_p - Cout)).reshape(1, Cout_p).astype(jnp.float32)

    J, Mt = Cout_p // tile_n, M_p // tm
    itemsize = jnp.dtype(compute_dtype).itemsize
    out_itemsize = jnp.dtype(x_nchw.dtype).itemsize

    # ---- grid order: keep the operand with higher refetch cost resident -----
    x_img_bytes = s * s * Rows_p * Cin_p * itemsize
    w_tile_bytes = KH * KW * Cin_p * tile_n * itemsize
    # HBM refetch bytes: (N,J,M) order = N*x + N*J*w ; (J,N,M) = N*J*x + J*w
    swap = N * x_img_bytes * (J - 1) < J * w_tile_bytes * (N - 1)
    if swap:
        grid = (J, N, Mt)
        x_map = lambda j, n, m: (n, 0, 0, 0)
        w_map = lambda j, n, m: (0, 0, j)
        b_map = lambda j, n, m: (0, j)
        o_map = lambda j, n, m: (n, m, j)
    else:
        grid = (N, J, Mt)
        x_map = lambda n, j, m: (n, 0, 0, 0)
        w_map = lambda n, j, m: (0, 0, j)
        b_map = lambda n, j, m: (0, j)
        o_map = lambda n, j, m: (n, m, j)

    kernel = functools.partial(_conv_relu_kernel,
                               KH=KH, KW=KW, stride=s, Wq=Wq, tm=tm)

    # VMEM budget: double-buffered blocks + f32 accumulator + slack.
    need = 2 * (x_img_bytes + w_tile_bytes + tile_n * 4
                + tm * tile_n * out_itemsize)
    need += tm * tile_n * 4 + tm * Cin_p * itemsize + (4 << 20)
    vmem_limit = int(min(64 << 20, max(need, 16 << 20)))

    cost = pl.CostEstimate(
        flops=2 * N * M_p * KH * KW * Cin_p * Cout_p,
        transcendentals=0,
        bytes_accessed=(x.size * itemsize + w.size * itemsize + b.size * 4
                        + N * M_p * Cout_p * out_itemsize),
    )

    out_flat = pl.pallas_call(
        kernel,
        out_shape=jax.ShapeDtypeStruct((N, M_p, Cout_p), x_nchw.dtype),
        grid_spec=pltpu.PrefetchScalarGridSpec(
            num_scalar_prefetch=0,
            grid=grid,
            in_specs=[
                pl.BlockSpec((1, s * s, Rows_p, Cin_p), x_map),
                pl.BlockSpec((KH * KW, Cin_p, tile_n), w_map),
                pl.BlockSpec((1, tile_n), b_map),
            ],
            out_specs=pl.BlockSpec((1, tm, tile_n), o_map),
        ),
        compiler_params=pltpu.CompilerParams(
            dimension_semantics=("parallel", "parallel", "parallel"),
            vmem_limit_bytes=vmem_limit,
        ),
        cost_estimate=cost,
    )(x, w, b)

    # Drop junk rows/cols + channel padding; back to NCHW to match PyTorch.
    # (For NHWC-consuming downstream layers, skip the final transpose.)
    out = out_flat[:, :Ho * Wq, :Cout].reshape(N, Ho, Wq, Cout)[:, :, :Wo, :]
    return jnp.transpose(out, (0, 3, 1, 2))


def _reference(x_nchw, weight, bias, *, stride=1, padding=1):
    y = jax.lax.conv_general_dilated(
        x_nchw, weight,
        window_strides=(stride, stride),
        padding=((padding, padding), (padding, padding)),
        dimension_numbers=("NCHW", "OIHW", "NCHW"),
    )
    return jnp.maximum(y + bias.reshape(1, -1, 1, 1), 0.0)


if __name__ == "__main__":
    key = jax.random.PRNGKey(0)
    k_x, k_w, k_b = jax.random.split(key, 3)

    # BasicConv2d(in_channels=4, out_channels=8, kernel_size=3, padding=1)
    N, Cin, H, W = 2, 4, 16, 16
    Cout, KH, KW = 8, 3, 3

    x = jax.random.normal(k_x, (N, Cin, H, W), dtype=jnp.float32)
    weight = jax.random.normal(k_w, (Cout, Cin, KH, KW), dtype=jnp.float32) * 0.1
    bias = jax.random.normal(k_b, (Cout,), dtype=jnp.float32) * 0.1

    # --- stride=1, f32 compute (bit-accurate path) ---
    run = jax.jit(functools.partial(basic_conv2d, stride=1, padding=1))
    out = jax.block_until_ready(run(x, weight, bias))
    ref = _reference(x, weight, bias, stride=1, padding=1)
    assert out.shape == (N, Cout, H, W), out.shape
    assert jnp.allclose(out, ref, atol=1e-4, rtol=1e-4), "stride=1 f32 mismatch"

    # --- stride=2 (space-to-depth phase path) ---
    run_s2 = jax.jit(functools.partial(basic_conv2d, stride=2, padding=1))
    out_s2 = jax.block_until_ready(run_s2(x, weight, bias))
    ref_s2 = _reference(x, weight, bias, stride=2, padding=1)
    assert out_s2.shape == ref_s2.shape, (out_s2.shape, ref_s2.shape)
    assert jnp.allclose(out_s2, ref_s2, atol=1e-4, rtol=1e-4), "stride=2 mismatch"

    # --- bf16 fast path (f32 accumulation), looser tolerance ---
    run_bf16 = jax.jit(functools.partial(basic_conv2d, stride=1, padding=1,
                                         compute_dtype=jnp.bfloat16))
    out_bf16 = jax.block_until_ready(run_bf16(x, weight, bias))
    assert jnp.allclose(out_bf16, ref, atol=5e-2, rtol=5e-2), "bf16 mismatch"

    print("KERNEL_OK")
</pallas_src>

<mosaic_0001>
module attributes {stable_mosaic.version = 11 : i64} {
  func.func @_conv_relu_kernel(%arg0: i32, %arg1: i32, %arg2: i32, %arg3: memref<1x1x328x128xf32, #tpu.memory_space<vmem>>, %arg4: memref<9x128x128xf32, #tpu.memory_space<vmem>>, %arg5: memref<1x128xf32, #tpu.memory_space<vmem>>, %arg6: memref<1x288x128xf32, #tpu.memory_space<vmem>>) attributes {dimension_semantics = [#tpu.dimension_semantics<parallel>, #tpu.dimension_semantics<parallel>, #tpu.dimension_semantics<parallel>], iteration_bounds = array<i64: 1, 2, 1>, scalar_prefetch = 0 : i64, scratch_operands = 0 : i64, tpu.core_type = #tpu.core_type<tc>, window_params = [{transform_indices = @transform_0, window_bounds = array<i64: 1, 1, 328, 128>}, {transform_indices = @transform_1, window_bounds = array<i64: 9, 128, 128>}, {transform_indices = @transform_2, window_bounds = array<i64: 1, 128>}, {transform_indices = @transform_3, window_bounds = array<i64: 1, 288, 128>}]} {
    %c288_i32 = arith.constant 288 : i32
    %0 = arith.muli %arg2, %c288_i32 : i32
    %1 = tpu.assume_multiple %0, 8 : i32
    %cst = arith.constant 0.000000e+00 : f32
    %2 = vector.broadcast %cst : f32 to vector<288x128xf32>
    %c0_i32 = arith.constant 0 : i32
    %3 = arith.addi %1, %c0_i32 : i32
    %c0 = arith.constant 0 : index
    %c0_0 = arith.constant 0 : index
    %4 = arith.index_cast %3 : i32 to index
    %c0_1 = arith.constant 0 : index
    %5 = vector.load %arg3[%c0, %c0_0, %4, %c0_1] : memref<1x1x328x128xf32, #tpu.memory_space<vmem>>, vector<1x1x288x128xf32>
    %6 = vector.shape_cast %5 : vector<1x1x288x128xf32> to vector<288x128xf32>
    %c0_2 = arith.constant 0 : index
    %c0_3 = arith.constant 0 : index
    %c0_4 = arith.constant 0 : index
    %7 = vector.load %arg4[%c0_2, %c0_3, %c0_4] : memref<9x128x128xf32, #tpu.memory_space<vmem>>, vector<1x128x128xf32>
    %8 = vector.shape_cast %7 : vector<1x128x128xf32> to vector<128x128xf32>
    %cst_5 = arith.constant dense<0.000000e+00> : vector<288x128xf32>
    %9 = tpu.matmul %6, %8, %cst_5 {dimension_numbers = #tpu.dot_dimension_numbers<[1], [0], [0], [1], [0, 0, 1, 1], [], []>} : vector<288x128xf32>, vector<128x128xf32>, vector<288x128xf32> -> vector<288x128xf32>
    %10 = arith.addf %2, %9 : vector<288x128xf32>
    %c1_i32 = arith.constant 1 : i32
    %11 = arith.addi %1, %c1_i32 : i32
    %c0_6 = arith.constant 0 : index
    %c0_7 = arith.constant 0 : index
    %12 = arith.index_cast %11 : i32 to index
    %c0_8 = arith.constant 0 : index
    %13 = vector.load %arg3[%c0_6, %c0_7, %12, %c0_8] : memref<1x1x328x128xf32, #tpu.memory_space<vmem>>, vector<1x1x288x128xf32>
    %14 = vector.shape_cast %13 : vector<1x1x288x128xf32> to vector<288x128xf32>
    %c1 = arith.constant 1 : index
    %c0_9 = arith.constant 0 : index
    %c0_10 = arith.constant 0 : index
    %15 = vector.load %arg4[%c1, %c0_9, %c0_10] : memref<9x128x128xf32, #tpu.memory_space<vmem>>, vector<1x128x128xf32>
    %16 = vector.shape_cast %15 : vector<1x128x128xf32> to vector<128x128xf32>
    %cst_11 = arith.constant dense<0.000000e+00> : vector<288x128xf32>
    %17 = tpu.matmul %14, %16, %cst_11 {dimension_numbers = #tpu.dot_dimension_numbers<[1], [0], [0], [1], [0, 0, 1, 1], [], []>} : vector<288x128xf32>, vector<128x128xf32>, vector<288x128xf32> -> vector<288x128xf32>
    %18 = arith.addf %10, %17 : vector<288x128xf32>
    %c2_i32 = arith.constant 2 : i32
    %19 = arith.addi %1, %c2_i32 : i32
    %c0_12 = arith.constant 0 : index
    %c0_13 = arith.constant 0 : index
    %20 = arith.index_cast %19 : i32 to index
    %c0_14 = arith.constant 0 : index
    %21 = vector.load %arg3[%c0_12, %c0_13, %20, %c0_14] : memref<1x1x328x128xf32, #tpu.memory_space<vmem>>, vector<1x1x288x128xf32>
    %22 = vector.shape_cast %21 : vector<1x1x288x128xf32> to vector<288x128xf32>
    %c2 = arith.constant 2 : index
    %c0_15 = arith.constant 0 : index
    %c0_16 = arith.constant 0 : index
    %23 = vector.load %arg4[%c2, %c0_15, %c0_16] : memref<9x128x128xf32, #tpu.memory_space<vmem>>, vector<1x128x128xf32>
    %24 = vector.shape_cast %23 : vector<1x128x128xf32> to vector<128x128xf32>
    %cst_17 = arith.constant dense<0.000000e+00> : vector<288x128xf32>
    %25 = tpu.matmul %22, %24, %cst_17 {dimension_numbers = #tpu.dot_dimension_numbers<[1], [0], [0], [1], [0, 0, 1, 1], [], []>} : vector<288x128xf32>, vector<128x128xf32>, vector<288x128xf32> -> vector<288x128xf32>
    %26 = arith.addf %18, %25 : vector<288x128xf32>
    %c18_i32 = arith.constant 18 : i32
    %27 = arith.addi %1, %c18_i32 : i32
    %c0_18 = arith.constant 0 : index
    %c0_19 = arith.constant 0 : index
    %28 = arith.index_cast %27 : i32 to index
    %c0_20 = arith.constant 0 : index
    %29 = vector.load %arg3[%c0_18, %c0_19, %28, %c0_20] : memref<1x1x328x128xf32, #tpu.memory_space<vmem>>, vector<1x1x288x128xf32>
    %30 = vector.shape_cast %29 : vector<1x1x288x128xf32> to vector<288x128xf32>
    %c3 = arith.constant 3 : index
    %c0_21 = arith.constant 0 : index
    %c0_22 = arith.constant 0 : index
    %31 = vector.load %arg4[%c3, %c0_21, %c0_22] : memref<9x128x128xf32, #tpu.memory_space<vmem>>, vector<1x128x128xf32>
    %32 = vector.shape_cast %31 : vector<1x128x128xf32> to vector<128x128xf32>
    %cst_23 = arith.constant dense<0.000000e+00> : vector<288x128xf32>
    %33 = tpu.matmul %30, %32, %cst_23 {dimension_numbers = #tpu.dot_dimension_numbers<[1], [0], [0], [1], [0, 0, 1, 1], [], []>} : vector<288x128xf32>, vector<128x128xf32>, vector<288x128xf32> -> vector<288x128xf32>
    %34 = arith.addf %26, %33 : vector<288x128xf32>
    %c19_i32 = arith.constant 19 : i32
    %35 = arith.addi %1, %c19_i32 : i32
    %c0_24 = arith.constant 0 : index
    %c0_25 = arith.constant 0 : index
    %36 = arith.index_cast %35 : i32 to index
    %c0_26 = arith.constant 0 : index
    %37 = vector.load %arg3[%c0_24, %c0_25, %36, %c0_26] : memref<1x1x328x128xf32, #tpu.memory_space<vmem>>, vector<1x1x288x128xf32>
    %38 = vector.shape_cast %37 : vector<1x1x288x128xf32> to vector<288x128xf32>
    %c4 = arith.constant 4 : index
    %c0_27 = arith.constant 0 : index
    %c0_28 = arith.constant 0 : index
    %39 = vector.load %arg4[%c4, %c0_27, %c0_28] : memref<9x128x128xf32, #tpu.memory_space<vmem>>, vector<1x128x128xf32>
    %40 = vector.shape_cast %39 : vector<1x128x128xf32> to vector<128x128xf32>
    %cst_29 = arith.constant dense<0.000000e+00> : vector<288x128xf32>
    %41 = tpu.matmul %38, %40, %cst_29 {dimension_numbers = #tpu.dot_dimension_numbers<[1], [0], [0], [1], [0, 0, 1, 1], [], []>} : vector<288x128xf32>, vector<128x128xf32>, vector<288x128xf32> -> vector<288x128xf32>
    %42 = arith.addf %34, %41 : vector<288x128xf32>
    %c20_i32 = arith.constant 20 : i32
    %43 = arith.addi %1, %c20_i32 : i32
    %c0_30 = arith.constant 0 : index
    %c0_31 = arith.constant 0 : index
    %44 = arith.index_cast %43 : i32 to index
    %c0_32 = arith.constant 0 : index
    %45 = vector.load %arg3[%c0_30, %c0_31, %44, %c0_32] : memref<1x1x328x128xf32, #tpu.memory_space<vmem>>, vector<1x1x288x128xf32>
    %46 = vector.shape_cast %45 : vector<1x1x288x128xf32> to vector<288x128xf32>
    %c5 = arith.constant 5 : index
    %c0_33 = arith.constant 0 : index
    %c0_34 = arith.constant 0 : index
    %47 = vector.load %arg4[%c5, %c0_33, %c0_34] : memref<9x128x128xf32, #tpu.memory_space<vmem>>, vector<1x128x128xf32>
    %48 = vector.shape_cast %47 : vector<1x128x128xf32> to vector<128x128xf32>
    %cst_35 = arith.constant dense<0.000000e+00> : vector<288x128xf32>
    %49 = tpu.matmul %46, %48, %cst_35 {dimension_numbers = #tpu.dot_dimension_numbers<[1], [0], [0], [1], [0, 0, 1, 1], [], []>} : vector<288x128xf32>, vector<128x128xf32>, vector<288x128xf32> -> vector<288x128xf32>
    %50 = arith.addf %42, %49 : vector<288x128xf32>
    %c36_i32 = arith.constant 36 : i32
    %51 = arith.addi %1, %c36_i32 : i32
    %c0_36 = arith.constant 0 : index
    %c0_37 = arith.constant 0 : index
    %52 = arith.index_cast %51 : i32 to index
    %c0_38 = arith.constant 0 : index
    %53 = vector.load %arg3[%c0_36, %c0_37, %52, %c0_38] : memref<1x1x328x128xf32, #tpu.memory_space<vmem>>, vector<1x1x288x128xf32>
    %54 = vector.shape_cast %53 : vector<1x1x288x128xf32> to vector<288x128xf32>
    %c6 = arith.constant 6 : index
    %c0_39 = arith.constant 0 : index
    %c0_40 = arith.constant 0 : index
    %55 = vector.load %arg4[%c6, %c0_39, %c0_40] : memref<9x128x128xf32, #tpu.memory_space<vmem>>, vector<1x128x128xf32>
    %56 = vector.shape_cast %55 : vector<1x128x128xf32> to vector<128x128xf32>
    %cst_41 = arith.constant dense<0.000000e+00> : vector<288x128xf32>
    %57 = tpu.matmul %54, %56, %cst_41 {dimension_numbers = #tpu.dot_dimension_numbers<[1], [0], [0], [1], [0, 0, 1, 1], [], []>} : vector<288x128xf32>, vector<128x128xf32>, vector<288x128xf32> -> vector<288x128xf32>
    %58 = arith.addf %50, %57 : vector<288x128xf32>
    %c37_i32 = arith.constant 37 : i32
    %59 = arith.addi %1, %c37_i32 : i32
    %c0_42 = arith.constant 0 : index
    %c0_43 = arith.constant 0 : index
    %60 = arith.index_cast %59 : i32 to index
    %c0_44 = arith.constant 0 : index
    %61 = vector.load %arg3[%c0_42, %c0_43, %60, %c0_44] : memref<1x1x328x128xf32, #tpu.memory_space<vmem>>, vector<1x1x288x128xf32>
    %62 = vector.shape_cast %61 : vector<1x1x288x128xf32> to vector<288x128xf32>
    %c7 = arith.constant 7 : index
    %c0_45 = arith.constant 0 : index
    %c0_46 = arith.constant 0 : index
    %63 = vector.load %arg4[%c7, %c0_45, %c0_46] : memref<9x128x128xf32, #tpu.memory_space<vmem>>, vector<1x128x128xf32>
    %64 = vector.shape_cast %63 : vector<1x128x128xf32> to vector<128x128xf32>
    %cst_47 = arith.constant dense<0.000000e+00> : vector<288x128xf32>
    %65 = tpu.matmul %62, %64, %cst_47 {dimension_numbers = #tpu.dot_dimension_numbers<[1], [0], [0], [1], [0, 0, 1, 1], [], []>} : vector<288x128xf32>, vector<128x128xf32>, vector<288x128xf32> -> vector<288x128xf32>
    %66 = arith.addf %58, %65 : vector<288x128xf32>
    %c38_i32 = arith.constant 38 : i32
    %67 = arith.addi %1, %c38_i32 : i32
    %c0_48 = arith.constant 0 : index
    %c0_49 = arith.constant 0 : index
    %68 = arith.index_cast %67 : i32 to index
    %c0_50 = arith.constant 0 : index
    %69 = vector.load %arg3[%c0_48, %c0_49, %68, %c0_50] : memref<1x1x328x128xf32, #tpu.memory_space<vmem>>, vector<1x1x288x128xf32>
    %70 = vector.shape_cast %69 : vector<1x1x288x128xf32> to vector<288x128xf32>
    %c8 = arith.constant 8 : index
    %c0_51 = arith.constant 0 : index
    %c0_52 = arith.constant 0 : index
    %71 = vector.load %arg4[%c8, %c0_51, %c0_52] : memref<9x128x128xf32, #tpu.memory_space<vmem>>, vector<1x128x128xf32>
    %72 = vector.shape_cast %71 : vector<1x128x128xf32> to vector<128x128xf32>
    %cst_53 = arith.constant dense<0.000000e+00> : vector<288x128xf32>
    %73 = tpu.matmul %70, %72, %cst_53 {dimension_numbers = #tpu.dot_dimension_numbers<[1], [0], [0], [1], [0, 0, 1, 1], [], []>} : vector<288x128xf32>, vector<128x128xf32>, vector<288x128xf32> -> vector<288x128xf32>
    %74 = arith.addf %66, %73 : vector<288x128xf32>
    %c0_54 = arith.constant 0 : index
    %c0_55 = arith.constant 0 : index
    %75 = vector.load %arg5[%c0_54, %c0_55] : memref<1x128xf32, #tpu.memory_space<vmem>>, vector<1x128xf32>
    %76 = vector.broadcast %75 : vector<1x128xf32> to vector<288x128xf32>
    %77 = arith.addf %74, %76 : vector<288x128xf32>
    %cst_56 = arith.constant 0.000000e+00 : f32
    %78 = vector.broadcast %cst_56 : f32 to vector<288x128xf32>
    %79 = arith.maximumf %77, %78 : vector<288x128xf32>
    %c0_57 = arith.constant 0 : index
    %c0_58 = arith.constant 0 : index
    %c0_59 = arith.constant 0 : index
    %80 = vector.load %arg6[%c0_57, %c0_58, %c0_59] : memref<1x288x128xf32, #tpu.memory_space<vmem>>, vector<1x288x128xf32>
    %81 = vector.shape_cast %80 : vector<1x288x128xf32> to vector<288x128xf32>
    %82 = vector.shape_cast %79 : vector<288x128xf32> to vector<1x288x128xf32>
    tpu.vector_store %arg6[%c0_57, %c0_58, %c0_59], %82 {strides = array<i32>} : memref<1x288x128xf32, #tpu.memory_space<vmem>>, vector<1x288x128xf32>,
    return
  }
  func.func @transform_0(%arg0: i32, %arg1: i32, %arg2: i32) -> (i32, i32, i32, i32) {
    %c0_i32 = arith.constant 0 : i32
    %c0_i32_0 = arith.constant 0 : i32
    %c0_i32_1 = arith.constant 0 : i32
    %c0_i32_2 = arith.constant 0 : i32
    return %arg1, %c0_i32, %c0_i32_0, %c0_i32_1 : i32, i32, i32, i32
  }
  func.func @transform_1(%arg0: i32, %arg1: i32, %arg2: i32) -> (i32, i32, i32) {
    %c0_i32 = arith.constant 0 : i32
    %c0_i32_0 = arith.constant 0 : i32
    %c0_i32_1 = arith.constant 0 : i32
    return %c0_i32, %c0_i32_0, %arg0 : i32, i32, i32
  }
  func.func @transform_2(%arg0: i32, %arg1: i32, %arg2: i32) -> (i32, i32) {
    %c0_i32 = arith.constant 0 : i32
    %c0_i32_0 = arith.constant 0 : i32
    return %c0_i32, %arg0 : i32, i32
  }
  func.func @transform_3(%arg0: i32, %arg1: i32, %arg2: i32) -> (i32, i32, i32) {
    %c0_i32 = arith.constant 0 : i32
    return %arg1, %arg2, %arg0 : i32, i32, i32
  }
}

</mosaic_0001>

<bundles_post_ra>
// kernel: basic_conv2d.1
= control target key start
LH: loop header
LB: loop body
LE: loop exit
PB: predicated region body
PF: predicated region fallthrough
CT: control target
= control target key end

     0   :  { %s2917_s12 = smov 0   ;;  %s2919_s13 = smov 0   ;;  %s3944_s0 = inlined_call_operand.vmem [shape: f32[2,1,328,128], index: 0, kind: input, shape index: {}]   ;;  %s3945_s1 = inlined_call_operand.vmem [shape: f32[9,128,128], index: 1, kind: input, shape index: {}]   ;;  %s3946_s2 = inlined_call_operand.vmem [shape: f32[1,128], index: 2, kind: input, shape index: {}]   ;;  %s3947_s3 = inlined_call_operand.vmem [shape: f32[2,288,128], index: 3, kind: output, shape index: {}]  }
   0x1   :  { %s2921_s14 = smov 0  }
   0x2 LB: > { %s28_s15 = sadd.s32 1, %s2891_s13  ;;  %p2376_p0 = scmp.ge.s32.totalorder %s2895_s14, 1  ;;  %s2895_s14 = sphi %s2921_s14, %s13_s14   ;;  %s2891_s13 = sphi %s2919_s13, %s3949_s13   ;;  %s2887_s12 = sphi %s2917_s12, %s3948_s12  }
   0x3   : > { %p30_p1 = scmp.ge.s32.totalorder %s28_s15, 2  ;;  %p177_p2 = scmp.lt.s32.totalorder %s2895_s14, 3 }
   0x5   : > { %s3951_s15 = smov (%p30_p1, %s28_s15), 0  ;;  %p178_p3 = pnand %p2376_p0, %p177_p2 }
   0x6   : > { %p215_p4 = scmp.lt.s32.totalorder (!%p178_p3), %s2887_s12, 1 }
   0x7   : > { %181 = sbr.rel (%p178_p3) target bundleno = 827 (0x33b), region = 32 }
   0xc   : > { %v2430_v0 = vld [vmem:[%s3945_s1 + $0xf8] sm:$0xff]  ;;  %v2429_v1 = vld [vmem:[%s3945_s1 + $0xf0] sm:$0xff]  ;;  %v2428_v2 = vld [vmem:[%s3945_s1 + $0xe8] sm:$0xff]  ;;  %s3953_s12 = smov (!%p215_p4, %s2887_s12), 1 }
   0xd   : > { %2797 = vmatpush.msra.mxu1 %v2430_v0  ;;  %2798 = vmatpush.msra.mxu2 %v2430_v0  ;;  %v2427_v3 = vld [vmem:[%s3945_s1 + $0xe0] sm:$0xff]  ;;  %v2426_v4 = vld [vmem:[%s3945_s1 + $0xd8] sm:$0xff]  ;;  %v2425_v5 = vld [vmem:[%s3945_s1 + $0xd0] sm:$0xff]  ;;  %s2845_s19 = smul.u32 328, %s3953_s12 }
   0xe   : > { %2799 = vmatpush.msra.mxu3 %v2430_v0  ;;  %349 = vmatpush.msra.mxu0 %v2430_v0  ;;  %v2424_v6 = vld [vmem:[%s3945_s1 + $0xc8] sm:$0xff]  ;;  %v2423_v7 = vld [vmem:[%s3945_s1 + $0xc0] sm:$0xff]  ;;  %v2422_v8 = vld [vmem:[%s3945_s1 + $0xb8] sm:$0xff]  ;;  %s2846_s22 = smul.u32 288, %s3953_s12 }
   0xf   : > { %2800 = vmatpush.msra.mxu1 %v2429_v1  ;;  %2801 = vmatpush.msra.mxu2 %v2429_v1  ;;  %v2421_v9 = vld [vmem:[%s3945_s1 + $0xb0] sm:$0xff]  ;;  %v2420_v10 = vld [vmem:[%s3945_s1 + $0xa8] sm:$0xff]  ;;  %v2419_v11 = vld [vmem:[%s3945_s1 + $0xa0] sm:$0xff]  ;;  %s2990_s26 = scalar_lea.vmem %s3944_s0, %s2845_s19 }
  0x10   : > { %2802 = vmatpush.msra.mxu3 %v2429_v1  ;;  %350 = vmatpush.msra.mxu0 %v2429_v1  ;;  %v2418_v12 = vld [vmem:[%s3945_s1 + $0x98] sm:$0xff]  ;;  %v2417_v13 = vld [vmem:[%s3945_s1 + $0x90] sm:$0xff]  ;;  %v2416_v14 = vld [vmem:[%s3945_s1 + $0x88] sm:$0xff]  ;;  %s3772_s25 = scalar_lea.vmem %s3947_s3, %s2846_s22 }
  0x11   : > { %2803 = vmatpush.msra.mxu1 %v2428_v2  ;;  %2804 = vmatpush.msra.mxu2 %v2428_v2  ;;  %v2415_v15 = vld [vmem:[%s3945_s1 + $0x80] sm:$0xff]  ;;  %v2388_v16 = vld [vmem:[%s2990_s26 + $0x49] sm:$0xff]  ;;  %v2397_v17 = vld [vmem:[%s2990_s26 + $0x91] sm:$0xff] }
  0x12   : > { %2805 = vmatpush.msra.mxu3 %v2428_v2  ;;  %351 = vmatpush.msra.mxu0 %v2428_v2  ;;  %v2482_v18 = vld [vmem:[%s3945_s1 + $0x178] sm:$0xff]  ;;  %v2481_v22 = vld [vmem:[%s3945_s1 + $0x170] sm:$0xff]  ;;  %v2480_v25 = vld [vmem:[%s3945_s1 + $0x168] sm:$0xff] }
  0x13   : > { %2806 = vmatpush.msra.mxu1 %v2427_v3  ;;  %2807 = vmatpush.msra.mxu2 %v2427_v3  ;;  %v2406_v19 = vld [vmem:[%s2990_s26 + $0xd9] sm:$0xff]  ;;  %v292_v23 = vld [vmem:[%s3945_s1 + $0x70] sm:$0xff]  ;;  %v2379_v26 = vld [vmem:[%s2990_s26 + $0x1] sm:$0xff] }
  0x14   : > { %2808 = vmatpush.msra.mxu3 %v2427_v3  ;;  %352 = vmatpush.msra.mxu0 %v2427_v3  ;;  %v293_v20 = vld [vmem:[%s3945_s1 + $0x78] sm:$0xff]  ;;  %v2533_v24 = vld [vmem:[%s3945_s1 + $0x1f0] sm:$0xff]  ;;  %v291_v27 = vld [vmem:[%s3945_s1 + $0x68] sm:$0xff] }
  0x15   : > { %2809 = vmatpush.msra.mxu1 %v2426_v4  ;;  %2810 = vmatpush.msra.mxu2 %v2426_v4  ;;  %v2534_v21 = vld [vmem:[%s3945_s1 + $0x1f8] sm:$0xff]  ;;  %v2532_v29 = vld [vmem:[%s3945_s1 + $0x1e8] sm:$0xff]  ;;  %v2479_v32 = vld [vmem:[%s3945_s1 + $0x160] sm:$0xff] }
  0x16   : > { %2811 = vmatpush.msra.mxu3 %v2426_v4  ;;  %353 = vmatpush.msra.mxu0 %v2426_v4  ;;  %v2586_v28 = vld [vmem:[%s3945_s1 + $0x278] sm:$0xff]  ;;  %v2585_v33 = vld [vmem:[%s3945_s1 + $0x270] sm:$0xff]  ;;  %v2407_v34 = vld [vmem:[%s2990_s26 + $0xe1] sm:$0xff] }
  0x17   : > { %2812 = vmatpush.msra.mxu1 %v2425_v5  ;;  %2813 = vmatpush.msra.mxu2 %v2425_v5  ;;  %v2389_v30 = vld [vmem:[%s2990_s26 + $0x51] sm:$0xff]  ;;  %v2398_v31 = vld [vmem:[%s2990_s26 + $0x99] sm:$0xff]  ;;  %v2584_v38 = vld [vmem:[%s3945_s1 + $0x268] sm:$0xff] }
  0x18   : > { %2814 = vmatpush.msra.mxu3 %v2425_v5  ;;  %354 = vmatpush.msra.mxu0 %v2425_v5  ;;  %v290_v35 = vld [vmem:[%s3945_s1 + $0x60] sm:$0xff]  ;;  %v2478_v37 = vld [vmem:[%s3945_s1 + $0x158] sm:$0xff]  ;;  %v2477_v41 = vld [vmem:[%s3945_s1 + $0x150] sm:$0xff] }
  0x19   : > { %2815 = vmatpush.msra.mxu1 %v2424_v6  ;;  %2816 = vmatpush.msra.mxu2 %v2424_v6  ;;  %v2531_v36 = vld [vmem:[%s3945_s1 + $0x1e0] sm:$0xff]  ;;  %v289_v39 = vld [vmem:[%s3945_s1 + $0x58] sm:$0xff]  ;;  %v2380_v42 = vld [vmem:[%s2990_s26 + $0x9] sm:$0xff] }
  0x1a   : > { %2817 = vmatpush.msra.mxu3 %v2424_v6  ;;  %355 = vmatpush.msra.mxu0 %v2424_v6  ;;  %v2530_v40 = vld [vmem:[%s3945_s1 + $0x1d8] sm:$0xff]  ;;  %v288_v43 = vld [vmem:[%s3945_s1 + $0x50] sm:$0xff]  ;;  %v2583_v44 = vld [vmem:[%s3945_s1 + $0x260] sm:$0xff] }
  0x1b   : > { %2818 = vmatpush.msra.mxu1 %v2423_v7  ;;  %2819 = vmatpush.msra.mxu2 %v2423_v7  ;;  %v2529_v45 = vld [vmem:[%s3945_s1 + $0x1d0] sm:$0xff]  ;;  %v2390_v46 = vld [vmem:[%s2990_s26 + $0x59] sm:$0xff]  ;;  %v2399_v47 = vld [vmem:[%s2990_s26 + $0xa1] sm:$0xff] }
  0x1c   : > { %2820 = vmatpush.msra.mxu3 %v2423_v7  ;;  %356 = vmatpush.msra.mxu0 %v2423_v7  ;;  %v2476_v48 = vld [vmem:[%s3945_s1 + $0x148] sm:$0xff]  ;;  %v2582_v49 = vld [vmem:[%s3945_s1 + $0x258] sm:$0xff]  ;;  %v2475_v53 = vld [vmem:[%s3945_s1 + $0x140] sm:$0xff] }
  0x1d   : > { %2821 = vmatpush.msra.mxu1 %v2422_v8  ;;  %2822 = vmatpush.msra.mxu2 %v2422_v8  ;;  %v2408_v50 = vld [vmem:[%s2990_s26 + $0xe9] sm:$0xff]  ;;  %v286_v55 = vld [vmem:[%s3945_s1 + $0x40] sm:$0xff]  ;;  %v2474_v57 = vld [vmem:[%s3945_s1 + $0x138] sm:$0xff] }
  0x1e   : > { %2823 = vmatpush.msra.mxu3 %v2422_v8  ;;  %357 = vmatpush.msra.mxu0 %v2422_v8  ;;  %v287_v51 = vld [vmem:[%s3945_s1 + $0x48] sm:$0xff]  ;;  %v2581_v54 = vld [vmem:[%s3945_s1 + $0x250] sm:$0xff]  ;;  %v2527_v56 = vld [vmem:[%s3945_s1 + $0x1c0] sm:$0xff] }
  0x1f   : > { %2824 = vmatpush.msra.mxu1 %v2421_v9  ;;  %2825 = vmatpush.msra.mxu2 %v2421_v9  ;;  %v2528_v52 = vld [vmem:[%s3945_s1 + $0x1c8] sm:$0xff]  ;;  %v2381_v58 = vld [vmem:[%s2990_s26 + $0x11] sm:$0xff]  ;;  %v2579_v1 = vld [vmem:[%s3945_s1 + $0x240] sm:$0xff] }
  0x20   : > { %2826 = vmatpush.msra.mxu3 %v2421_v9  ;;  %358 = vmatpush.msra.mxu0 %v2421_v9  ;;  %v285_v59 = vld [vmem:[%s3945_s1 + $0x38] sm:$0xff]  ;;  %v2580_v60 = vld [vmem:[%s3945_s1 + $0x248] sm:$0xff]  ;;  %v2473_v0 = vld [vmem:[%s3945_s1 + $0x130] sm:$0xff] }
  0x21   : > { %2827 = vmatpush.msra.mxu1 %v2420_v10  ;;  %2828 = vmatpush.msra.mxu2 %v2420_v10  ;;  %v2526_v61 = vld [vmem:[%s3945_s1 + $0x1b8] sm:$0xff]  ;;  %v2391_v62 = vld [vmem:[%s2990_s26 + $0x61] sm:$0xff]  ;;  %v2400_v63 = vld [vmem:[%s2990_s26 + $0xa9] sm:$0xff] }
  0x22   : > { %2829 = vmatpush.msra.mxu3 %v2420_v10  ;;  %359 = vmatpush.msra.mxu0 %v2420_v10  ;;  %v2409_v2 = vld [vmem:[%s2990_s26 + $0xf1] sm:$0xff]  ;;  %v2472_v5 = vld [vmem:[%s3945_s1 + $0x128] sm:$0xff]  ;;  %v2471_v9 = vld [vmem:[%s3945_s1 + $0x120] sm:$0xff] }
  0x23   : > { %2830 = vmatpush.msra.mxu1 %v2419_v11  ;;  %2831 = vmatpush.msra.mxu2 %v2419_v11  ;;  %v284_v3 = vld [vmem:[%s3945_s1 + $0x30] sm:$0xff]  ;;  %v2578_v6 = vld [vmem:[%s3945_s1 + $0x238] sm:$0xff]  ;;  %v283_v7 = vld [vmem:[%s3945_s1 + $0x28] sm:$0xff] }
  0x24   : > { %2832 = vmatpush.msra.mxu3 %v2419_v11  ;;  %360 = vmatpush.msra.mxu0 %v2419_v11  ;;  %v2525_v4 = vld [vmem:[%s3945_s1 + $0x1b0] sm:$0xff]  ;;  %v2524_v8 = vld [vmem:[%s3945_s1 + $0x1a8] sm:$0xff]  ;;  %v2382_v10 = vld [vmem:[%s2990_s26 + $0x19] sm:$0xff] }
  0x25   : > { %2833 = vmatpush.msra.mxu1 %v2418_v12  ;;  %2834 = vmatpush.msra.mxu2 %v2418_v12  ;;  %v282_v11 = vld [vmem:[%s3945_s1 + $0x20] sm:$0xff] }
  0x26   : > { %2835 = vmatpush.msra.mxu3 %v2418_v12  ;;  %361 = vmatpush.msra.mxu0 %v2418_v12  ;;  %v2577_v12 = vld [vmem:[%s3945_s1 + $0x230] sm:$0xff] }
  0x27   : > { %2836 = vmatpush.msra.mxu1 %v2417_v13  ;;  %2837 = vmatpush.msra.mxu2 %v2417_v13 }
  0x28   : > { %2838 = vmatpush.msra.mxu3 %v2417_v13  ;;  %362 = vmatpush.msra.mxu0 %v2417_v13  ;;  %v2523_v13 = vld [vmem:[%s3945_s1 + $0x1a0] sm:$0xff] }
  0x29   : > { %2839 = vmatpush.msra.mxu1 %v2416_v14  ;;  %2840 = vmatpush.msra.mxu2 %v2416_v14 }
  0x2a   : > { %2841 = vmatpush.msra.mxu3 %v2416_v14  ;;  %363 = vmatpush.msra.mxu0 %v2416_v14  ;;  %v2392_v14 = vld [vmem:[%s2990_s26 + $0x69] sm:$0xff] }
  0x2b   : > { %2842 = vmatpush.msra.mxu1 %v2415_v15  ;;  %2843 = vmatpush.msra.mxu2 %v2415_v15 }
  0x2c   : > { %392 = vmatmul.f32.vlgmr.msra.gmra.mxu1 %v2388_v16  ;;  %419 = vmatmul.f32.vlgmr.msra.gmra.mxu2 %v2397_v17  ;;  %v2470_v16 = vld [vmem:[%s3945_s1 + $0x118] sm:$0xff]  ;;  %v2576_v17 = vld [vmem:[%s3945_s1 + $0x228] sm:$0xff] }
  0x2d   : > { %654 = vmatpush.msrb.mxu2 %v2482_v18  ;;  %2844 = vmatpush.msra.mxu3 %v2415_v15  ;;  %v2410_v18 = vld [vmem:[%s2990_s26 + $0xf9] sm:$0xff] }
  0x2e   : > { %446 = vmatmul.f32.vlgmr.msra.gmra.mxu3 %v2406_v19  ;;  %474 = vmatpush.msrb.mxu1 %v293_v20  ;;  %v281_v19 = vld [vmem:[%s3945_s1 + $0x18] sm:$0xff] }
  0x2f   : > { %870 = vmatpush.msrb.mxu3 %v2534_v21  ;;  %655 = vmatpush.msrb.mxu2 %v2481_v22  ;;  %v2522_v20 = vld [vmem:[%s3945_s1 + $0x198] sm:$0xff]  ;;  %v2469_v21 = vld [vmem:[%s3945_s1 + $0x110] sm:$0xff]  ;;  %v2575_v22 = vld [vmem:[%s3945_s1 + $0x220] sm:$0xff] }
  0x30   : > { %364 = vmatpush.msra.mxu0 %v2415_v15  ;;  %475 = vmatpush.msrb.mxu1 %v292_v23  ;;  %v2401_v15 = vld [vmem:[%s2990_s26 + $0xb1] sm:$0xff] }
  0x31   : > { %871 = vmatpush.msrb.mxu3 %v2533_v24  ;;  %656 = vmatpush.msrb.mxu2 %v2480_v25  ;;  %v280_v23 = vld [vmem:[%s3945_s1 + $0x10] sm:$0xff]  ;;  %v2468_v25 = vld [vmem:[%s3945_s1 + $0x108] sm:$0xff] }
  0x32   : > { %365 = vmatmul.f32.vlgmr.msra.gmra.mxu0 %v2379_v26  ;;  %476 = vmatpush.msrb.mxu1 %v291_v27  ;;  %v2521_v24 = vld [vmem:[%s3945_s1 + $0x190] sm:$0xff]  ;;  %v2383_v26 = vld [vmem:[%s2990_s26 + $0x21] sm:$0xff] }
  0x33   : > { %1086 = vmatpush.msrb.mxu0 %v2586_v28  ;;  %872 = vmatpush.msrb.mxu3 %v2532_v29  ;;  %v279_v27 = vld [vmem:[%s3945_s1 + $0x8] sm:$0xff]  ;;  %v2574_v28 = vld [vmem:[%s3945_s1 + $0x218] sm:$0xff] }
  0x34   : > { %395 = vmatmul.f32.gmra.mxu1 %v2389_v30  ;;  %422 = vmatmul.f32.gmra.mxu2 %v2398_v31  ;;  %v2520_v29 = vld [vmem:[%s3945_s1 + $0x188] sm:$0xff]  ;;  %v2393_v30 = vld [vmem:[%s2990_s26 + $0x71] sm:$0xff]  ;;  %v2402_v31 = vld [vmem:[%s2990_s26 + $0xb9] sm:$0xff] }
  0x35   : > { %657 = vmatpush.msrb.mxu2 %v2479_v32  ;;  %1087 = vmatpush.msrb.mxu0 %v2585_v33  ;;  %v2467_v32 = vld [vmem:[%s3945_s1 + $0x100] sm:$0xff]  ;;  %v2573_v33 = vld [vmem:[%s3945_s1 + $0x210] sm:$0xff] }
  0x36   : > { %449 = vmatmul.f32.gmra.mxu3 %v2407_v34  ;;  %477 = vmatpush.msrb.mxu1 %v290_v35  ;;  %v2411_v34 = vld [vmem:[%s2990_s26 + $0x101] sm:$0xff] }
  0x37   : > { %873 = vmatpush.msrb.mxu3 %v2531_v36  ;;  %658 = vmatpush.msrb.mxu2 %v2478_v37  ;;  %v278_v35 = vld [vmem:[%s3945_s1] sm:$0xff]  ;;  %v2690_v37 = vld [vmem:[%s3945_s1 + $0x378] sm:$0xff] }
  0x38   : > { %1088 = vmatpush.msrb.mxu0 %v2584_v38  ;;  %478 = vmatpush.msrb.mxu1 %v289_v39  ;;  %v2519_v36 = vld [vmem:[%s3945_s1 + $0x180] sm:$0xff]  ;;  %v2572_v38 = vld [vmem:[%s3945_s1 + $0x208] sm:$0xff]  ;;  %v2742_v39 = vld [vmem:[%s3945_s1 + $0x3f8] sm:$0xff] }
  0x39   : > { %874 = vmatpush.msrb.mxu3 %v2530_v40  ;;  %659 = vmatpush.msrb.mxu2 %v2477_v41  ;;  %v2638_v40 = vld [vmem:[%s3945_s1 + $0x2f8] sm:$0xff]  ;;  %v2384_v41 = vld [vmem:[%s2990_s26 + $0x29] sm:$0xff] }
  0x3a   : > { %368 = vmatmul.f32.gmra.mxu0 %v2380_v42  ;;  %479 = vmatpush.msrb.mxu1 %v288_v43  ;;  %v2571_v42 = vld [vmem:[%s3945_s1 + $0x200] sm:$0xff] }
  0x3b   : > { %1089 = vmatpush.msrb.mxu0 %v2583_v44  ;;  %875 = vmatpush.msrb.mxu3 %v2529_v45  ;;  %v2394_v43 = vld [vmem:[%s2990_s26 + $0x79] sm:$0xff]  ;;  %v2403_v44 = vld [vmem:[%s2990_s26 + $0xc1] sm:$0xff]  ;;  %v2412_v45 = vld [vmem:[%s2990_s26 + $0x109] sm:$0xff] }
  0x3c   : > { %398 = vmatmul.f32.gmra.mxu1 %v2390_v46  ;;  %425 = vmatmul.f32.gmra.mxu2 %v2399_v47  ;;  %v2794_v46 = vld [vmem:[%s3945_s1 + $0x478] sm:$0xff] }
  0x3d   : > { %660 = vmatpush.msrb.mxu2 %v2476_v48  ;;  %1090 = vmatpush.msrb.mxu0 %v2582_v49  ;;  %v2385_v47 = vld [vmem:[%s2990_s26 + $0x31] sm:$0xff]  ;;  %v2395_v48 = vld [vmem:[%s2990_s26 + $0x81] sm:$0xff]  ;;  %v2404_v49 = vld [vmem:[%s2990_s26 + $0xc9] sm:$0xff] }
  0x3e   : > { %452 = vmatmul.f32.gmra.mxu3 %v2408_v50  ;;  %480 = vmatpush.msrb.mxu1 %v287_v51  ;;  %v2413_v50 = vld [vmem:[%s2990_s26 + $0x111] sm:$0xff] }
  0x3f   : > { %876 = vmatpush.msrb.mxu3 %v2528_v52  ;;  %661 = vmatpush.msrb.mxu2 %v2475_v53  ;;  %v2689_v51 = vld [vmem:[%s3945_s1 + $0x370] sm:$0xff] }
  0x40   : > { %1091 = vmatpush.msrb.mxu0 %v2581_v54  ;;  %481 = vmatpush.msrb.mxu1 %v286_v55  ;;  %v2741_v52 = vld [vmem:[%s3945_s1 + $0x3f0] sm:$0xff]  ;;  %v2386_v54 = vld [vmem:[%s2990_s26 + $0x39] sm:$0xff] }
  0x41   : > { %877 = vmatpush.msrb.mxu3 %v2527_v56  ;;  %662 = vmatpush.msrb.mxu2 %v2474_v57  ;;  %v2637_v53 = vld [vmem:[%s3945_s1 + $0x2f0] sm:$0xff]  ;;  %v2414_v57 = vld [vmem:[%s2990_s26 + $0x119] sm:$0xff] }
  0x42   : > { %371 = vmatmul.f32.gmra.mxu0 %v2381_v58  ;;  %482 = vmatpush.msrb.mxu1 %v285_v59  ;;  %v2396_v55 = vld [vmem:[%s2990_s26 + $0x89] sm:$0xff]  ;;  %v2405_v56 = vld [vmem:[%s2990_s26 + $0xd1] sm:$0xff]  ;;  %v2387_v59 = vld [vmem:[%s2990_s26 + $0x41] sm:$0xff] }
  0x43   : > { %1092 = vmatpush.msrb.mxu0 %v2580_v60  ;;  %878 = vmatpush.msrb.mxu3 %v2526_v61  ;;  %v2793_v58 = vld [vmem:[%s3945_s1 + $0x470] sm:$0xff]  ;;  %v242_v60 = vld [vmem:[%s2990_s26] sm:$0xff] }
  0x44   : > { %401 = vmatmul.f32.gmra.mxu1 %v2391_v62  ;;  %428 = vmatmul.f32.gmra.mxu2 %v2400_v63  ;;  %v2431_v61 = vld [vmem:[%s2990_s26 + $0x2] sm:$0xff]  ;;  %v2483_v62 = vld [vmem:[%s2990_s26 + $0x12] sm:$0xff] }
  0x45   : > { %663 = vmatpush.msrb.mxu2 %v2473_v0  ;;  %1093 = vmatpush.msrb.mxu0 %v2579_v1  ;;  %v2688_v63 = vld [vmem:[%s3945_s1 + $0x368] sm:$0xff]  ;;  %v2535_v1 = vld [vmem:[%s2990_s26 + $0x13] sm:$0xff] }
  0x46   : > { %455 = vmatmul.f32.gmra.mxu3 %v2409_v2  ;;  %483 = vmatpush.msrb.mxu1 %v284_v3  ;;  %v2740_v0 = vld [vmem:[%s3945_s1 + $0x3e8] sm:$0xff] }
  0x47   : > { %879 = vmatpush.msrb.mxu3 %v2525_v4  ;;  %664 = vmatpush.msrb.mxu2 %v2472_v5  ;;  %v243_v2 = vld [vmem:[%s2990_s26 + $0x8] sm:$0xff]  ;;  %v2484_v4 = vld [vmem:[%s2990_s26 + $0x1a] sm:$0xff] }
  0x48   : > { %1094 = vmatpush.msrb.mxu0 %v2578_v6  ;;  %484 = vmatpush.msrb.mxu1 %v283_v7  ;;  %v2432_v3 = vld [vmem:[%s2990_s26 + $0xa] sm:$0xff]  ;;  %v2536_v7 = vld [vmem:[%s2990_s26 + $0x1b] sm:$0xff] }
  0x49   : > { %880 = vmatpush.msrb.mxu3 %v2524_v8  ;;  %665 = vmatpush.msrb.mxu2 %v2471_v9  ;;  %v2636_v5 = vld [vmem:[%s3945_s1 + $0x2e8] sm:$0xff]  ;;  %v244_v8 = vld [vmem:[%s2990_s26 + $0x10] sm:$0xff] }
  0x4a   : > { %374 = vmatmul.f32.gmra.mxu0 %v2382_v10  ;;  %485 = vmatpush.msrb.mxu1 %v282_v11  ;;  %v2792_v6 = vld [vmem:[%s3945_s1 + $0x468] sm:$0xff]  ;;  %v245_v11 = vld [vmem:[%s2990_s26 + $0x18] sm:$0xff] }
  0x4b   : > { %1095 = vmatpush.msrb.mxu0 %v2577_v12  ;;  %881 = vmatpush.msrb.mxu3 %v2523_v13  ;;  %v2485_v9 = vld [vmem:[%s2990_s26 + $0x22] sm:$0xff]  ;;  %v2486_v13 = vld [vmem:[%s2990_s26 + $0x2a] sm:$0xff] }
  0x4c   : > { %404 = vmatmul.f32.gmra.mxu1 %v2392_v14  ;;  %431 = vmatmul.f32.gmra.mxu2 %v2401_v15  ;;  %v2537_v10 = vld [vmem:[%s2990_s26 + $0x23] sm:$0xff] }
  0x4d   : > { %666 = vmatpush.msrb.mxu2 %v2470_v16  ;;  %1096 = vmatpush.msrb.mxu0 %v2576_v17  ;;  %v2687_v12 = vld [vmem:[%s3945_s1 + $0x360] sm:$0xff]  ;;  %v2538_v16 = vld [vmem:[%s2990_s26 + $0x2b] sm:$0xff] }
  0x4e   : > { %458 = vmatmul.f32.gmra.mxu3 %v2410_v18  ;;  %486 = vmatpush.msrb.mxu1 %v281_v19  ;;  %v2739_v14 = vld [vmem:[%s3945_s1 + $0x3e0] sm:$0xff]  ;;  %v2487_v18 = vld [vmem:[%s2990_s26 + $0x32] sm:$0xff] }
  0x4f   : > { %882 = vmatpush.msrb.mxu3 %v2522_v20  ;;  %667 = vmatpush.msrb.mxu2 %v2469_v21  ;;  %v2635_v15 = vld [vmem:[%s3945_s1 + $0x2e0] sm:$0xff]  ;;  %v2539_v20 = vld [vmem:[%s2990_s26 + $0x33] sm:$0xff]  ;;  %v247_v21 = vld [vmem:[%s2990_s26 + $0x28] sm:$0xff] }
  0x50   : > { %1097 = vmatpush.msrb.mxu0 %v2575_v22  ;;  %487 = vmatpush.msrb.mxu1 %v280_v23  ;;  %v246_v17 = vld [vmem:[%s2990_s26 + $0x20] sm:$0xff]  ;;  %v2686_v23 = vld [vmem:[%s3945_s1 + $0x358] sm:$0xff] }
  0x51   : > { %883 = vmatpush.msrb.mxu3 %v2521_v24  ;;  %668 = vmatpush.msrb.mxu2 %v2468_v25  ;;  %v2791_v19 = vld [vmem:[%s3945_s1 + $0x460] sm:$0xff]  ;;  %v2738_v24 = vld [vmem:[%s3945_s1 + $0x3d8] sm:$0xff] }
  0x52   : > { %377 = vmatmul.f32.gmra.mxu0 %v2383_v26  ;;  %488 = vmatpush.msrb.mxu1 %v279_v27  ;;  %v2488_v22 = vld [vmem:[%s2990_s26 + $0x3a] sm:$0xff]  ;;  %v248_v27 = vld [vmem:[%s2990_s26 + $0x30] sm:$0xff] }
  0x53   : > { %1098 = vmatpush.msrb.mxu0 %v2574_v28  ;;  %884 = vmatpush.msrb.mxu3 %v2520_v29  ;;  %v2540_v25 = vld [vmem:[%s2990_s26 + $0x3b] sm:$0xff] }
  0x54   : > { %407 = vmatmul.f32.gmra.mxu1 %v2393_v30  ;;  %434 = vmatmul.f32.gmra.mxu2 %v2402_v31  ;;  %v2634_v26 = vld [vmem:[%s3945_s1 + $0x2d8] sm:$0xff]  ;;  %v2489_v28 = vld [vmem:[%s2990_s26 + $0x42] sm:$0xff] }
  0x55   : > { %669 = vmatpush.msrb.mxu2 %v2467_v32  ;;  %1099 = vmatpush.msrb.mxu0 %v2573_v33  ;;  %v2790_v29 = vld [vmem:[%s3945_s1 + $0x458] sm:$0xff]  ;;  %v2541_v30 = vld [vmem:[%s2990_s26 + $0x43] sm:$0xff] }
  0x56   : > { %461 = vmatmul.f32.gmra.mxu3 %v2411_v34  ;;  %489 = vmatpush.msrb.mxu1 %v278_v35  ;;  %v249_v32 = vld [vmem:[%s2990_s26 + $0x38] sm:$0xff]  ;;  %v2490_v33 = vld [vmem:[%s2990_s26 + $0x4a] sm:$0xff] }
  0x57   : > { %885 = vmatpush.msrb.mxu3 %v2519_v36  ;;  %1518 = vmatpush.msra.mxu2 %v2690_v37  ;;  %v2685_v34 = vld [vmem:[%s3945_s1 + $0x350] sm:$0xff] }
  0x58   : > { %1100 = vmatpush.msrb.mxu0 %v2572_v38  ;;  %1302 = vmatpush.msra.mxu1 %v2638_v40  ;;  %v2542_v37 = vld [vmem:[%s2990_s26 + $0x4b] sm:$0xff] }
  0x59   : > { %1734 = vmatpush.msra.mxu3 %v2742_v39  ;;  %1519 = vmatpush.msra.mxu2 %v2689_v51  ;;  %v2737_v38 = vld [vmem:[%s3945_s1 + $0x3d0] sm:$0xff]  ;;  %v2492_v51 = vld [vmem:[%s2990_s26 + $0x5a] sm:$0xff] }
  0x5a   : > { %380 = vmatmul.f32.gmra.mxu0 %v2384_v41  ;;  %1303 = vmatpush.msra.mxu1 %v2637_v53  ;;  %v250_v41 = vld [vmem:[%s2990_s26 + $0x40] sm:$0xff] }
  0x5b   : > { %1101 = vmatpush.msrb.mxu0 %v2571_v42  ;;  %1735 = vmatpush.msra.mxu3 %v2741_v52  ;;  %v2633_v42 = vld [vmem:[%s3945_s1 + $0x2d0] sm:$0xff] }
  0x5c   : > { %410 = vmatmul.f32.gmra.mxu1 %v2394_v43  ;;  %437 = vmatmul.f32.gmra.mxu2 %v2403_v44  ;;  %v2491_v43 = vld [vmem:[%s2990_s26 + $0x52] sm:$0xff] }
  0x5d   : > { %1950 = vmatpush.msra.mxu0 %v2794_v46  ;;  %1520 = vmatpush.msra.mxu2 %v2688_v63  ;;  %v2543_v46 = vld [vmem:[%s2990_s26 + $0x53] sm:$0xff] }
  0x5e   : > { %464 = vmatmul.f32.gmra.mxu3 %v2412_v45  ;;  %1304 = vmatpush.msra.mxu1 %v2636_v5  ;;  %v2494_v5 = vld [vmem:[%s2990_s26 + $0x6a] sm:$0xff] }
  0x5f   : > { %1951 = vmatpush.msra.mxu0 %v2793_v58  ;;  %1736 = vmatpush.msra.mxu3 %v2740_v0  ;;  %v252_v58 = vld [vmem:[%s2990_s26 + $0x50] sm:$0xff]  ;;  %v2545_v0 = vld [vmem:[%s2990_s26 + $0x63] sm:$0xff] }
  0x60   : > { %1521 = vmatpush.msra.mxu2 %v2687_v12  ;;  %1305 = vmatpush.msra.mxu1 %v2635_v15  ;;  %v2683_v12 = vld [vmem:[%s3945_s1 + $0x340] sm:$0xff] }
  0x61   : > { %1952 = vmatpush.msra.mxu0 %v2792_v6  ;;  %1737 = vmatpush.msra.mxu3 %v2739_v14  ;;  %v2735_v14 = vld [vmem:[%s3945_s1 + $0x3c0] sm:$0xff] }
  0x62   : > { %383 = vmatmul.f32.gmra.mxu0 %v2385_v47  ;;  %1522 = vmatpush.msra.mxu2 %v2686_v23  ;;  %v2789_v47 = vld [vmem:[%s3945_s1 + $0x450] sm:$0xff]  ;;  %v2631_v15 = vld [vmem:[%s3945_s1 + $0x2c0] sm:$0xff] }
  0x63   : > { %1953 = vmatpush.msra.mxu0 %v2791_v19  ;;  %1738 = vmatpush.msra.mxu3 %v2738_v24  ;;  %v2787_v23 = vld [vmem:[%s3945_s1 + $0x440] sm:$0xff] }
  0x64   : > { %413 = vmatmul.f32.gmra.mxu1 %v2395_v48  ;;  %440 = vmatmul.f32.gmra.mxu2 %v2404_v49 }
  0x65   : > { %1306 = vmatpush.msra.mxu1 %v2634_v26  ;;  %1954 = vmatpush.msra.mxu0 %v2790_v29  ;;  %v2548_v26 = vld [vmem:[%s2990_s26 + $0x7b] sm:$0xff]  ;;  %v256_v29 = vld [vmem:[%s2990_s26 + $0x70] sm:$0xff] }
  0x66   : > { %467 = vmatmul.f32.gmra.mxu3 %v2413_v50  ;;  %1523 = vmatpush.msra.mxu2 %v2685_v34  ;;  %v251_v50 = vld [vmem:[%s2990_s26 + $0x48] sm:$0xff] }
  0x67   : > { %1739 = vmatpush.msra.mxu3 %v2737_v38  ;;  %1307 = vmatpush.msra.mxu1 %v2633_v42  ;;  %v2549_v38 = vld [vmem:[%s2990_s26 + $0x83] sm:$0xff] }
  0x68   : > { %1955 = vmatpush.msra.mxu0 %v2789_v47  ;;  %v2498_v47 = vld [vmem:[%s2990_s26 + $0x8a] sm:$0xff] }
  0x6a   : > { %386 = vmatmul.f32.gmra.mxu0 %v2386_v54  ;;  %v2544_v54 = vld [vmem:[%s2990_s26 + $0x5b] sm:$0xff] }
  0x6c   : > { %416 = vmatmul.f32.gmra.mxu1 %v2396_v55  ;;  %443 = vmatmul.f32.gmra.mxu2 %v2405_v56  ;;  %v2684_v55 = vld [vmem:[%s3945_s1 + $0x348] sm:$0xff] }
  0x6d   : > { %1524 = vmatpush.msra.mxu2 %v2684_v55  ;;  %v2550_v55 = vld [vmem:[%s2990_s26 + $0x8b] sm:$0xff] }
  0x6e   : > { %470 = vmatmul.f32.gmra.mxu3 %v2414_v57 }
  0x6f   : > { %1525 = vmatpush.msra.mxu2 %v2683_v12  ;;  %v2733_v12 = vld [vmem:[%s3945_s1 + $0x3b0] sm:$0xff] }
  0x72   : > { %389 = vmatmul.f32.gmra.mxu0 %v2387_v59  ;;  %v2736_v59 = vld [vmem:[%s3945_s1 + $0x3c8] sm:$0xff] }
  0x73   : > { %1740 = vmatpush.msra.mxu3 %v2736_v59 }
  0x74   : > { %490 = vmatmul.f32.vlgmr.msrb.gmra.mxu1 %v242_v60  ;;  %670 = vmatmul.f32.vlgmr.msrb.gmra.mxu2 %v2431_v61  ;;  %v2493_v60 = vld [vmem:[%s2990_s26 + $0x62] sm:$0xff] }
  0x75   : > { %v2632_v61 = vld [vmem:[%s3945_s1 + $0x2c8] sm:$0xff]  ;;  %1741 = vmatpush.msra.mxu3 %v2735_v14 }
  0x76   : > { %886 = vmatmul.f32.vlgmr.msrb.gmra.mxu3 %v2483_v62  ;;  %1308 = vmatpush.msra.mxu1 %v2632_v61  ;;  %v2499_v61 = vld [vmem:[%s2990_s26 + $0x92] sm:$0xff] }
  0x78   : > { %1309 = vmatpush.msra.mxu1 %v2631_v15  ;;  %v259_v15 = vld [vmem:[%s2990_s26 + $0x88] sm:$0xff] }
  0x7a   : > { %1102 = vmatmul.f32.vlgmr.msrb.gmra.mxu0 %v2535_v1 }
  0x7c   : > { %493 = vmatmul.f32.gmra.mxu1 %v243_v2  ;;  %673 = vmatmul.f32.gmra.mxu2 %v2432_v3  ;;  %v253_v3 = vld [vmem:[%s2990_s26 + $0x58] sm:$0xff] }
  0x7e   : > { %889 = vmatmul.f32.gmra.mxu3 %v2484_v4 }
  0x82   : > { %1105 = vmatmul.f32.gmra.mxu0 %v2536_v7 }
  0x84   : > { %496 = vmatmul.f32.gmra.mxu1 %v244_v8  ;;  %676 = vmatmul.f32.gmra.mxu2 %v2483_v62  ;;  %v2546_v8 = vld [vmem:[%s2990_s26 + $0x6b] sm:$0xff] }
  0x86   : > { %892 = vmatmul.f32.gmra.mxu3 %v2485_v9 }
  0x8a   : > { %1108 = vmatmul.f32.gmra.mxu0 %v2537_v10 }
  0x8c   : > { %499 = vmatmul.f32.gmra.mxu1 %v245_v11  ;;  %679 = vmatmul.f32.gmra.mxu2 %v2484_v4  ;;  %v2788_v4 = vld [vmem:[%s3945_s1 + $0x448] sm:$0xff]  ;;  %v254_v11 = vld [vmem:[%s2990_s26 + $0x60] sm:$0xff] }
  0x8d   : > { %1956 = vmatpush.msra.mxu0 %v2788_v4 }
  0x8e   : > { %895 = vmatmul.f32.gmra.mxu3 %v2486_v13 }
  0x8f   : > { %1957 = vmatpush.msra.mxu0 %v2787_v23 }
  0x92   : > { %1111 = vmatmul.f32.gmra.mxu0 %v2538_v16 }
  0x94   : > { %502 = vmatmul.f32.gmra.mxu1 %v246_v17  ;;  %682 = vmatmul.f32.gmra.mxu2 %v2485_v9 }
  0x96   : > { %898 = vmatmul.f32.gmra.mxu3 %v2487_v18 }
  0x9a   : > { %1114 = vmatmul.f32.gmra.mxu0 %v2539_v20 }
  0x9c   : > { %505 = vmatmul.f32.gmra.mxu1 %v247_v21  ;;  %685 = vmatmul.f32.gmra.mxu2 %v2486_v13  ;;  %v2495_v13 = vld [vmem:[%s2990_s26 + $0x72] sm:$0xff]  ;;  %v255_v21 = vld [vmem:[%s2990_s26 + $0x68] sm:$0xff] }
  0x9e   : > { %901 = vmatmul.f32.gmra.mxu3 %v2488_v22 }
  0xa2   : > { %1117 = vmatmul.f32.gmra.mxu0 %v2540_v25 }
  0xa4   : > { %508 = vmatmul.f32.gmra.mxu1 %v248_v27  ;;  %688 = vmatmul.f32.gmra.mxu2 %v2487_v18  ;;  %v2547_v18 = vld [vmem:[%s2990_s26 + $0x73] sm:$0xff] }
  0xa6   : > { %904 = vmatmul.f32.gmra.mxu3 %v2489_v28 }
  0xa9   : > { %v3306_v31 = vpop.f32.mrf.mxu1 }
  0xaa   : > { %1120 = vmatmul.f32.gmra.mxu0 %v2541_v30  ;;  %v2497_v30 = vld [vmem:[%s2990_s26 + $0x82] sm:$0xff] }
  0xac   : > { %511 = vmatmul.f32.gmra.mxu1 %v249_v32  ;;  %691 = vmatmul.f32.gmra.mxu2 %v2488_v22  ;;  %v2496_v22 = vld [vmem:[%s2990_s26 + $0x7a] sm:$0xff] }
  0xad   : > { %v2682_v32 = vld [vmem:[%s3945_s1 + $0x338] sm:$0xff] }
  0xae   : > { %907 = vmatmul.f32.gmra.mxu3 %v2490_v33  ;;  %1526 = vmatpush.msra.mxu2 %v2682_v32 }
  0xaf   : > { %v3313_v35 = vpop.f32.mrf.mxu2  ;;  %v3315_v36 = vpop.f32.mrf.mxu0 }
  0xb1   : > { %v3321_v39 = vpop.f32.mrf.mxu1  ;;  %v3323_v40 = vpop.f32.mrf.mxu3 }
  0xb2   : > { %1123 = vmatmul.f32.gmra.mxu0 %v2542_v37 }
  0xb4   : > { %514 = vmatmul.f32.gmra.mxu1 %v250_v41  ;;  %694 = vmatmul.f32.gmra.mxu2 %v2489_v28  ;;  %v2630_v41 = vld [vmem:[%s3945_s1 + $0x2b8] sm:$0xff] }
  0xb5   : > { %1310 = vmatpush.msra.mxu1 %v2630_v41 }
  0xb6   : > { %910 = vmatmul.f32.gmra.mxu3 %v2491_v43 }
  0xb7   : > { %v3330_v44 = vpop.f32.mrf.mxu2  ;;  %v3332_v45 = vpop.f32.mrf.mxu0 }
  0xb9   : > { %v3338_v48 = vpop.f32.mrf.mxu1  ;;  %v3340_v49 = vpop.f32.mrf.mxu3 }
  0xba   : > { %1126 = vmatmul.f32.gmra.mxu0 %v2543_v46  ;;  %v257_v46 = vld [vmem:[%s2990_s26 + $0x78] sm:$0xff] }
  0xbc   : > { %517 = vmatmul.f32.gmra.mxu1 %v251_v50  ;;  %697 = vmatmul.f32.gmra.mxu2 %v2490_v33  ;;  %v2734_v33 = vld [vmem:[%s3945_s1 + $0x3b8] sm:$0xff] }
  0xbd   : > { %1742 = vmatpush.msra.mxu3 %v2734_v33  ;;  %v2786_v50 = vld [vmem:[%s3945_s1 + $0x438] sm:$0xff]  ;;  %v2785_v33 = vld [vmem:[%s3945_s1 + $0x430] sm:$0xff] }
  0xbe   : > { %913 = vmatmul.f32.gmra.mxu3 %v2492_v51  ;;  %1958 = vmatpush.msra.mxu0 %v2786_v50 }
  0xbf   : > { %v3344_v52 = vpop.f32.mrf.mxu2  ;;  %v3346_v53 = vpop.f32.mrf.mxu0  ;;  %1743 = vmatpush.msra.mxu3 %v2733_v12 }
  0xc0   : > { %1959 = vmatpush.msra.mxu0 %v2785_v33 }
  0xc1   : > { %v3352_v56 = vpop.f32.mrf.mxu1  ;;  %v3354_v57 = vpop.f32.mrf.mxu3 }
  0xc2   : > { %1129 = vmatmul.f32.gmra.mxu0 %v2544_v54 }
  0xc4   : > { %520 = vmatmul.f32.gmra.mxu1 %v252_v58  ;;  %700 = vmatmul.f32.gmra.mxu2 %v2491_v43 }
  0xc6   : > { %916 = vmatmul.f32.gmra.mxu3 %v2493_v60 }
  0xc7   : > { %v3364_v62 = vpop.f32.mrf.mxu2  ;;  %v3366_v63 = vpop.f32.mrf.mxu0 }
  0xc9   : > { %v3369_v1 = vpop.f32.mrf.mxu1  ;;  %v3371_v2 = vpop.f32.mrf.mxu3 }
  0xca   : > { %1132 = vmatmul.f32.gmra.mxu0 %v2545_v0 }
  0xcc   : > { %523 = vmatmul.f32.gmra.mxu1 %v253_v3  ;;  %703 = vmatmul.f32.gmra.mxu2 %v2492_v51  ;;  %v2681_v3 = vld [vmem:[%s3945_s1 + $0x330] sm:$0xff] }
  0xcd   : > { %1527 = vmatpush.msra.mxu2 %v2681_v3 }
  0xce   : > { %919 = vmatmul.f32.gmra.mxu3 %v2494_v5 }
  0xcf   : > { %v3378_v6 = vpop.f32.mrf.mxu2  ;;  %v3380_v7 = vpop.f32.mrf.mxu0 }
  0xd1   : > { %v3383_v9 = vpop.f32.mrf.mxu1  ;;  %v3385_v10 = vpop.f32.mrf.mxu3 }
  0xd2   : > { %1135 = vmatmul.f32.gmra.mxu0 %v2546_v8  ;;  %v2551_v8 = vld [vmem:[%s2990_s26 + $0x93] sm:$0xff] }
  0xd4   : > { %526 = vmatmul.f32.gmra.mxu1 %v254_v11  ;;  %706 = vmatmul.f32.gmra.mxu2 %v2493_v60  ;;  %v258_v60 = vld [vmem:[%s2990_s26 + $0x80] sm:$0xff] }
  0xd6   : > { %922 = vmatmul.f32.gmra.mxu3 %v2495_v13 }
  0xd7   : > { %v3398_v16 = vpop.f32.mrf.mxu2  ;;  %v3400_v17 = vpop.f32.mrf.mxu0 }
  0xd9   : > { %v3403_v19 = vpop.f32.mrf.mxu1  ;;  %v3405_v20 = vpop.f32.mrf.mxu3 }
  0xda   : > { %1138 = vmatmul.f32.gmra.mxu0 %v2547_v18  ;;  %v2629_v18 = vld [vmem:[%s3945_s1 + $0x2b0] sm:$0xff] }
  0xdb   : > { %1311 = vmatpush.msra.mxu1 %v2629_v18 }
  0xdc   : > { %529 = vmatmul.f32.gmra.mxu1 %v255_v21  ;;  %709 = vmatmul.f32.gmra.mxu2 %v2494_v5  ;;  %v2500_v21 = vld [vmem:[%s2990_s26 + $0x9a] sm:$0xff] }
  0xde   : > { %925 = vmatmul.f32.gmra.mxu3 %v2496_v22 }
  0xdf   : > { %v3412_v24 = vpop.f32.mrf.mxu2  ;;  %v3414_v25 = vpop.f32.mrf.mxu0 }
  0xe1   : > { %v3417_v27 = vpop.f32.mrf.mxu1  ;;  %v3419_v28 = vpop.f32.mrf.mxu3 }
  0xe2   : > { %1141 = vmatmul.f32.gmra.mxu0 %v2548_v26 }
  0xe4   : > { %532 = vmatmul.f32.gmra.mxu1 %v256_v29  ;;  %712 = vmatmul.f32.gmra.mxu2 %v2495_v13 }
  0xe6   : > { %928 = vmatmul.f32.gmra.mxu3 %v2497_v30 }
  0xe7   : > { %v3429_v34 = vpop.f32.mrf.mxu2  ;;  %v3431_v37 = vpop.f32.mrf.mxu0 }
  0xe9   : > { %v3437_v42 = vpop.f32.mrf.mxu1  ;;  %v3439_v43 = vpop.f32.mrf.mxu3 }
  0xea   : > { %1144 = vmatmul.f32.gmra.mxu0 %v2549_v38 }
  0xec   : > { %535 = vmatmul.f32.gmra.mxu1 %v257_v46  ;;  %715 = vmatmul.f32.gmra.mxu2 %v2496_v22  ;;  %v260_v46 = vld [vmem:[%s2990_s26 + $0x90] sm:$0xff] }
  0xee   : > { %931 = vmatmul.f32.gmra.mxu3 %v2498_v47 }
  0xef   : > { %v3446_v51 = vpop.f32.mrf.mxu2  ;;  %v3448_v54 = vpop.f32.mrf.mxu0 }
  0xf1   : > { %v3451_v58 = vpop.f32.mrf.mxu3  ;;  %v491_v59 = vpop.f32.mrf.mxu1 }
  0xf2   : > { %1147 = vmatmul.f32.gmra.mxu0 %v2550_v55  ;;  %v492_v0 = vadd.f32 %v491_v59, %v3315_v36 }
  0xf4   : > { %538 = vmatmul.f32.gmra.mxu1 %v258_v60  ;;  %718 = vmatmul.f32.gmra.mxu2 %v2497_v30  ;;  %v2552_v30 = vld [vmem:[%s2990_s26 + $0x9b] sm:$0xff] }
  0xf6   : > { %934 = vmatmul.f32.gmra.mxu3 %v2499_v61 }
  0xf7   : > { %v671_v4 = vpop.f32.mrf.mxu2  ;;  %v1103_v5 = vpop.f32.mrf.mxu0 }
  0xf8   : > { %v779_v11 = vadd.f32 %v671_v4, %v492_v0  ;;  %v2553_v0 = vld [vmem:[%s2990_s26 + $0xa3] sm:$0xff] }
  0xf9   : > { %v494_v13 = vpop.f32.mrf.mxu1  ;;  %v887_v14 = vpop.f32.mrf.mxu3  ;;  %v2680_v4 = vld [vmem:[%s3945_s1 + $0x328] sm:$0xff] }
  0xfa   : > { %v995_v36 = vadd.f32 %v887_v14, %v779_v11  ;;  %1150 = vmatmul.f32.gmra.mxu0 %v2551_v8  ;;  %v495_v23 = vadd.f32 %v494_v13, %v3332_v45  ;;  %v261_v11 = vld [vmem:[%s2990_s26 + $0x98] sm:$0xff]  ;;  %1528 = vmatpush.msra.mxu2 %v2680_v4  ;;  %v2628_v14 = vld [vmem:[%s3945_s1 + $0x2a8] sm:$0xff] }
  0xfb   : > { %1312 = vmatpush.msra.mxu1 %v2628_v14 }
  0xfc   : > { %v3468_v22 = vadd.f32 %v1103_v5, %v995_v36  ;;  %541 = vmatmul.f32.gmra.mxu1 %v259_v15  ;;  %721 = vmatmul.f32.gmra.mxu2 %v2498_v47  ;;  %v2501_v47 = vld [vmem:[%s2990_s26 + $0xa2] sm:$0xff] }
  0xfe   : > { %937 = vmatmul.f32.gmra.mxu3 %v2500_v21 }
  0xff   : > { %v674_v26 = vpop.f32.mrf.mxu2  ;;  %v1106_v29 = vpop.f32.mrf.mxu0 }
 0x100   : > { %v780_v32 = vadd.f32 %v674_v26, %v495_v23  ;;  %v2554_v23 = vld [vmem:[%s2990_s26 + $0xab] sm:$0xff] }
 0x101   : > { %v497_v38 = vpop.f32.mrf.mxu1  ;;  %v890_v41 = vpop.f32.mrf.mxu3 }
 0x102   : > { %v996_v50 = vadd.f32 %v890_v41, %v780_v32  ;;  %1153 = vmatmul.f32.gmra.mxu0 %v2552_v30  ;;  %v498_v45 = vadd.f32 %v497_v38, %v3346_v53  ;;  %v2732_v53 = vld [vmem:[%s3945_s1 + $0x3a8] sm:$0xff]  ;;  %v262_v32 = vld [vmem:[%s2990_s26 + $0xa0] sm:$0xff]  ;;  %v2503_v38 = vld [vmem:[%s2990_s26 + $0xb2] sm:$0xff] }
 0x103   : > { %1744 = vmatpush.msra.mxu3 %v2732_v53 }
 0x104   : > { %v3477_v55 = vadd.f32 %v1106_v29, %v996_v50  ;;  %544 = vmatmul.f32.gmra.mxu1 %v260_v46  ;;  %724 = vmatmul.f32.gmra.mxu2 %v2499_v61  ;;  %v2502_v61 = vld [vmem:[%s2990_s26 + $0xaa] sm:$0xff] }
 0x106   : > { %940 = vmatmul.f32.gmra.mxu3 %v2501_v47 }
 0x107   : > { %v677_v59 = vpop.f32.mrf.mxu2  ;;  %v1109_v60 = vpop.f32.mrf.mxu0 }
 0x108   : > { %v781_v3 = vadd.f32 %v677_v59, %v498_v45  ;;  %v2555_v45 = vld [vmem:[%s2990_s26 + $0xb3] sm:$0xff] }
 0x109   : > { %v500_v5 = vpop.f32.mrf.mxu1  ;;  %v893_v8 = vpop.f32.mrf.mxu3 }
 0x10a   : > { %v997_v12 = vadd.f32 %v893_v8, %v781_v3  ;;  %1156 = vmatmul.f32.gmra.mxu0 %v2553_v0  ;;  %v501_v15 = vadd.f32 %v500_v5, %v3366_v63  ;;  %v263_v3 = vld [vmem:[%s2990_s26 + $0xa8] sm:$0xff]  ;;  %v2679_v5 = vld [vmem:[%s3945_s1 + $0x320] sm:$0xff] }
 0x10b   : > { %v2504_v8 = vld [vmem:[%s2990_s26 + $0xba] sm:$0xff]  ;;  %1529 = vmatpush.msra.mxu2 %v2679_v5 }
 0x10c   : > { %v3489_v13 = vadd.f32 %v1109_v60, %v997_v12  ;;  %547 = vmatmul.f32.gmra.mxu1 %v261_v11  ;;  %727 = vmatmul.f32.gmra.mxu2 %v2500_v21  ;;  %v2784_v21 = vld [vmem:[%s3945_s1 + $0x428] sm:$0xff]  ;;  %v2627_v12 = vld [vmem:[%s3945_s1 + $0x2a0] sm:$0xff] }
 0x10d   : > { %1960 = vmatpush.msra.mxu0 %v2784_v21  ;;  %1313 = vmatpush.msra.mxu1 %v2627_v12 }
 0x10e   : > { %943 = vmatmul.f32.gmra.mxu3 %v2502_v61 }
 0x10f   : > { %v680_v36 = vpop.f32.mrf.mxu2  ;;  %v1112_v18 = vpop.f32.mrf.mxu0 }
 0x110   : > { %v782_v26 = vadd.f32 %v680_v36, %v501_v15  ;;  %v2556_v15 = vld [vmem:[%s2990_s26 + $0xbb] sm:$0xff] }
 0x111   : > { %v503_v29 = vpop.f32.mrf.mxu1  ;;  %v896_v30 = vpop.f32.mrf.mxu3 }
 0x112   : > { %v998_v33 = vadd.f32 %v896_v30, %v782_v26  ;;  %1159 = vmatmul.f32.gmra.mxu0 %v2554_v23  ;;  %v504_v41 = vadd.f32 %v503_v29, %v3380_v7  ;;  %v2731_v7 = vld [vmem:[%s3945_s1 + $0x3a0] sm:$0xff]  ;;  %v264_v23 = vld [vmem:[%s2990_s26 + $0xb0] sm:$0xff] }
 0x113   : > { %1745 = vmatpush.msra.mxu3 %v2731_v7  ;;  %v2505_v29 = vld [vmem:[%s2990_s26 + $0xc2] sm:$0xff] }
 0x114   : > { %v3501_v63 = vadd.f32 %v1112_v18, %v998_v33  ;;  %550 = vmatmul.f32.gmra.mxu1 %v262_v32  ;;  %730 = vmatmul.f32.gmra.mxu2 %v2501_v47 }
 0x116   : > { %946 = vmatmul.f32.gmra.mxu3 %v2503_v38 }
 0x117   : > { %v683_v46 = vpop.f32.mrf.mxu2  ;;  %v1115_v50 = vpop.f32.mrf.mxu0 }
 0x118   : > { %v783_v59 = vadd.f32 %v683_v46, %v504_v41  ;;  %v2557_v41 = vld [vmem:[%s2990_s26 + $0xc3] sm:$0xff] }
 0x119   : > { %v506_v60 = vpop.f32.mrf.mxu1  ;;  %v899_v0 = vpop.f32.mrf.mxu3 }
 0x11a   : > { %v999_v4 = vadd.f32 %v899_v0, %v783_v59  ;;  %1162 = vmatmul.f32.gmra.mxu0 %v2555_v45  ;;  %v507_v11 = vadd.f32 %v506_v60, %v3400_v17  ;;  %v2783_v17 = vld [vmem:[%s3945_s1 + $0x420] sm:$0xff]  ;;  %v265_v59 = vld [vmem:[%s2990_s26 + $0xb8] sm:$0xff]  ;;  %v2506_v0 = vld [vmem:[%s2990_s26 + $0xca] sm:$0xff] }
 0x11b   : > { %1961 = vmatpush.msra.mxu0 %v2783_v17 }
 0x11c   : > { %v3510_v47 = vadd.f32 %v1115_v50, %v999_v4  ;;  %553 = vmatmul.f32.gmra.mxu1 %v263_v3  ;;  %733 = vmatmul.f32.gmra.mxu2 %v2502_v61  ;;  %v2730_v4 = vld [vmem:[%s3945_s1 + $0x398] sm:$0xff] }
 0x11d   : > { %1746 = vmatpush.msra.mxu3 %v2730_v4 }
 0x11e   : > { %949 = vmatmul.f32.gmra.mxu3 %v2504_v8 }
 0x11f   : > { %v686_v53 = vpop.f32.mrf.mxu2  ;;  %v1118_v14 = vpop.f32.mrf.mxu0 }
 0x120   : > { %v784_v36 = vadd.f32 %v686_v53, %v507_v11  ;;  %v2558_v11 = vld [vmem:[%s2990_s26 + $0xcb] sm:$0xff] }
 0x121   : > { %v509_v61 = vpop.f32.mrf.mxu1  ;;  %v902_v18 = vpop.f32.mrf.mxu3 }
 0x122   : > { %v1000_v26 = vadd.f32 %v902_v18, %v784_v36  ;;  %1165 = vmatmul.f32.gmra.mxu0 %v2556_v15  ;;  %v510_v32 = vadd.f32 %v509_v61, %v3414_v25  ;;  %v2678_v25 = vld [vmem:[%s3945_s1 + $0x318] sm:$0xff]  ;;  %v266_v15 = vld [vmem:[%s2990_s26 + $0xc0] sm:$0xff] }
 0x123   : > { %1530 = vmatpush.msra.mxu2 %v2678_v25  ;;  %v2507_v36 = vld [vmem:[%s2990_s26 + $0xd2] sm:$0xff] }
 0x124   : > { %v3522_v30 = vadd.f32 %v1118_v14, %v1000_v26  ;;  %556 = vmatmul.f32.gmra.mxu1 %v264_v23  ;;  %736 = vmatmul.f32.gmra.mxu2 %v2503_v38  ;;  %v2782_v23 = vld [vmem:[%s3945_s1 + $0x418] sm:$0xff] }
 0x125   : > { %1962 = vmatpush.msra.mxu0 %v2782_v23 }
 0x126   : > { %952 = vmatmul.f32.gmra.mxu3 %v2505_v29 }
 0x127   : > { %v689_v33 = vpop.f32.mrf.mxu2  ;;  %v1121_v21 = vpop.f32.mrf.mxu0 }
 0x128   : > { %v785_v46 = vadd.f32 %v689_v33, %v510_v32  ;;  %v2559_v32 = vld [vmem:[%s2990_s26 + $0xd3] sm:$0xff] }
 0x129   : > { %v512_v50 = vpop.f32.mrf.mxu1  ;;  %v905_v45 = vpop.f32.mrf.mxu3 }
 0x12a   : > { %v1001_v60 = vadd.f32 %v905_v45, %v785_v46  ;;  %1168 = vmatmul.f32.gmra.mxu0 %v2557_v41  ;;  %v513_v3 = vadd.f32 %v512_v50, %v3431_v37  ;;  %v267_v46 = vld [vmem:[%s2990_s26 + $0xc8] sm:$0xff] }
 0x12c   : > { %v3531_v38 = vadd.f32 %v1121_v21, %v1001_v60  ;;  %559 = vmatmul.f32.gmra.mxu1 %v265_v59  ;;  %739 = vmatmul.f32.gmra.mxu2 %v2504_v8  ;;  %v2626_v8 = vld [vmem:[%s3945_s1 + $0x298] sm:$0xff]  ;;  %v2677_v59 = vld [vmem:[%s3945_s1 + $0x310] sm:$0xff] }
 0x12d   : > { %1314 = vmatpush.msra.mxu1 %v2626_v8  ;;  %1531 = vmatpush.msra.mxu2 %v2677_v59  ;;  %v2509_v8 = vld [vmem:[%s2990_s26 + $0xe2] sm:$0xff] }
 0x12e   : > { %955 = vmatmul.f32.gmra.mxu3 %v2506_v0 }
 0x12f   : > { %v692_v5 = vpop.f32.mrf.mxu2  ;;  %v1124_v7 = vpop.f32.mrf.mxu0 }
 0x130   : > { %v786_v12 = vadd.f32 %v692_v5, %v513_v3  ;;  %v2560_v3 = vld [vmem:[%s2990_s26 + $0xdb] sm:$0xff]  ;;  %v2729_v5 = vld [vmem:[%s3945_s1 + $0x390] sm:$0xff] }
 0x131   : > { %v515_v53 = vpop.f32.mrf.mxu1  ;;  %v908_v14 = vpop.f32.mrf.mxu3  ;;  %1747 = vmatpush.msra.mxu3 %v2729_v5 }
 0x132   : > { %v1002_v37 = vadd.f32 %v908_v14, %v786_v12  ;;  %1171 = vmatmul.f32.gmra.mxu0 %v2558_v11  ;;  %v516_v18 = vadd.f32 %v515_v53, %v3448_v54  ;;  %v268_v11 = vld [vmem:[%s2990_s26 + $0xd0] sm:$0xff] }
 0x133   : > { %v2625_v12 = vld [vmem:[%s3945_s1 + $0x290] sm:$0xff] }
 0x134   : > { %v3546_v61 = vadd.f32 %v1124_v7, %v1002_v37  ;;  %562 = vmatmul.f32.gmra.mxu1 %v266_v15  ;;  %742 = vmatmul.f32.gmra.mxu2 %v2505_v29  ;;  %v2508_v29 = vld [vmem:[%s2990_s26 + $0xda] sm:$0xff] }
 0x135   : > { %1315 = vmatpush.msra.mxu1 %v2625_v12 }
 0x136   : > { %958 = vmatmul.f32.gmra.mxu3 %v2507_v36 }
 0x137   : > { %v695_v26 = vpop.f32.mrf.mxu2  ;;  %v1127_v17 = vpop.f32.mrf.mxu0 }
 0x138   : > { %v787_v33 = vadd.f32 %v695_v26, %v516_v18  ;;  %v2561_v18 = vld [vmem:[%s2990_s26 + $0xe3] sm:$0xff]  ;;  %v2781_v26 = vld [vmem:[%s3945_s1 + $0x410] sm:$0xff] }
 0x139   : > { %v518_v21 = vpop.f32.mrf.mxu1  ;;  %v911_v41 = vpop.f32.mrf.mxu3  ;;  %1963 = vmatpush.msra.mxu0 %v2781_v26 }
 0x13a   : > { %v1003_v50 = vadd.f32 %v911_v41, %v787_v33  ;;  %1174 = vmatmul.f32.gmra.mxu0 %v2559_v32  ;;  %v519_v54 = vadd.f32 %v518_v21, %v3306_v31  ;;  %v269_v33 = vld [vmem:[%s2990_s26 + $0xd8] sm:$0xff] }
 0x13c   : > { %v3555_v45 = vadd.f32 %v1127_v17, %v1003_v50  ;;  %565 = vmatmul.f32.gmra.mxu1 %v267_v46  ;;  %745 = vmatmul.f32.gmra.mxu2 %v2506_v0 }
 0x13e   : > { %961 = vmatmul.f32.gmra.mxu3 %v2508_v29 }
 0x13f   : > { %v698_v60 = vpop.f32.mrf.mxu2  ;;  %v1130_v25 = vpop.f32.mrf.mxu0 }
 0x140   : > { %v788_v4 = vadd.f32 %v698_v60, %v519_v54  ;;  %v2562_v54 = vld [vmem:[%s2990_s26 + $0xeb] sm:$0xff] }
 0x141   : > { %v521_v7 = vpop.f32.mrf.mxu1  ;;  %v914_v0 = vpop.f32.mrf.mxu3  ;;  %v2676_v60 = vld [vmem:[%s3945_s1 + $0x308] sm:$0xff] }
 0x142   : > { %v1004_v31 = vadd.f32 %v914_v0, %v788_v4  ;;  %1177 = vmatmul.f32.gmra.mxu0 %v2560_v3  ;;  %v522_v14 = vadd.f32 %v521_v7, %v3321_v39  ;;  %v270_v4 = vld [vmem:[%s2990_s26 + $0xe0] sm:$0xff]  ;;  %1532 = vmatpush.msra.mxu2 %v2676_v60  ;;  %v2624_v0 = vld [vmem:[%s3945_s1 + $0x288] sm:$0xff] }
 0x143   : > { %1316 = vmatpush.msra.mxu1 %v2624_v0 }
 0x144   : > { %v3570_v53 = vadd.f32 %v1130_v25, %v1004_v31  ;;  %568 = vmatmul.f32.gmra.mxu1 %v268_v11  ;;  %748 = vmatmul.f32.gmra.mxu2 %v2507_v36  ;;  %v2510_v36 = vld [vmem:[%s2990_s26 + $0xea] sm:$0xff] }
 0x146   : > { %964 = vmatmul.f32.gmra.mxu3 %v2509_v8 }
 0x147   : > { %v701_v15 = vpop.f32.mrf.mxu2  ;;  %v1133_v37 = vpop.f32.mrf.mxu0 }
 0x148   : > { %v789_v23 = vadd.f32 %v701_v15, %v522_v14  ;;  %v2563_v14 = vld [vmem:[%s2990_s26 + $0xf3] sm:$0xff] }
 0x149   : > { %v524_v17 = vpop.f32.mrf.mxu1  ;;  %v917_v32 = vpop.f32.mrf.mxu3 }
 0x14a   : > { %v1005_v21 = vadd.f32 %v917_v32, %v789_v23  ;;  %1180 = vmatmul.f32.gmra.mxu0 %v2561_v18  ;;  %v525_v39 = vadd.f32 %v524_v17, %v3338_v48  ;;  %v2728_v48 = vld [vmem:[%s3945_s1 + $0x388] sm:$0xff]  ;;  %v2512_v17 = vld [vmem:[%s2990_s26 + $0xfa] sm:$0xff] }
 0x14b   : > { %1748 = vmatpush.msra.mxu3 %v2728_v48  ;;  %v271_v23 = vld [vmem:[%s2990_s26 + $0xe8] sm:$0xff] }
 0x14c   : > { %v3579_v41 = vadd.f32 %v1133_v37, %v1005_v21  ;;  %571 = vmatmul.f32.gmra.mxu1 %v269_v33  ;;  %751 = vmatmul.f32.gmra.mxu2 %v2508_v29  ;;  %v2511_v29 = vld [vmem:[%s2990_s26 + $0xf2] sm:$0xff] }
 0x14e   : > { %967 = vmatmul.f32.gmra.mxu3 %v2510_v36 }
 0x14f   : > { %v704_v46 = vpop.f32.mrf.mxu2  ;;  %v1136_v50 = vpop.f32.mrf.mxu0 }
 0x150   : > { %v790_v59 = vadd.f32 %v704_v46, %v525_v39  ;;  %v2564_v39 = vld [vmem:[%s2990_s26 + $0xfb] sm:$0xff] }
 0x151   : > { %v527_v25 = vpop.f32.mrf.mxu1  ;;  %v920_v3 = vpop.f32.mrf.mxu3 }
 0x152   : > { %v1006_v5 = vadd.f32 %v920_v3, %v790_v59  ;;  %1183 = vmatmul.f32.gmra.mxu0 %v2562_v54  ;;  %v528_v11 = vadd.f32 %v527_v25, %v3352_v56  ;;  %v272_v59 = vld [vmem:[%s2990_s26 + $0xf0] sm:$0xff]  ;;  %v2675_v25 = vld [vmem:[%s3945_s1 + $0x300] sm:$0xff] }
 0x153   : > { %v2513_v3 = vld [vmem:[%s2990_s26 + $0x102] sm:$0xff]  ;;  %1533 = vmatpush.msra.mxu2 %v2675_v25  ;;  %v2567_v25 = vld [vmem:[%s2990_s26 + $0x113] sm:$0xff] }
 0x154   : > { %v3591_v7 = vadd.f32 %v1136_v50, %v1006_v5  ;;  %574 = vmatmul.f32.gmra.mxu1 %v270_v4  ;;  %754 = vmatmul.f32.gmra.mxu2 %v2509_v8  ;;  %v2780_v8 = vld [vmem:[%s3945_s1 + $0x408] sm:$0xff]  ;;  %v2623_v5 = vld [vmem:[%s3945_s1 + $0x280] sm:$0xff] }
 0x155   : > { %1964 = vmatpush.msra.mxu0 %v2780_v8  ;;  %1317 = vmatpush.msra.mxu1 %v2623_v5 }
 0x156   : > { %970 = vmatmul.f32.gmra.mxu3 %v2511_v29 }
 0x157   : > { %v707_v31 = vpop.f32.mrf.mxu2  ;;  %v1139_v12 = vpop.f32.mrf.mxu0 }
 0x158   : > { %v791_v15 = vadd.f32 %v707_v31, %v528_v11  ;;  %v2565_v11 = vld [vmem:[%s2990_s26 + $0x103] sm:$0xff] }
 0x159   : > { %v530_v37 = vpop.f32.mrf.mxu1  ;;  %v923_v18 = vpop.f32.mrf.mxu3 }
 0x15a   : > { %v1007_v26 = vadd.f32 %v923_v18, %v791_v15  ;;  %1186 = vmatmul.f32.gmra.mxu0 %v2563_v14  ;;  %v531_v32 = vadd.f32 %v530_v37, %v3369_v1  ;;  %v2727_v1 = vld [vmem:[%s3945_s1 + $0x380] sm:$0xff]  ;;  %v273_v14 = vld [vmem:[%s2990_s26 + $0xf8] sm:$0xff]  ;;  %v2514_v37 = vld [vmem:[%s2990_s26 + $0x10a] sm:$0xff] }
 0x15b   : > { %1749 = vmatpush.msra.mxu3 %v2727_v1 }
 0x15c   : > { %v3603_v56 = vadd.f32 %v1139_v12, %v1007_v26  ;;  %577 = vmatmul.f32.gmra.mxu1 %v271_v23  ;;  %757 = vmatmul.f32.gmra.mxu2 %v2510_v36 }
 0x15e   : > { %973 = vmatmul.f32.gmra.mxu3 %v2512_v17 }
 0x15f   : > { %v710_v33 = vpop.f32.mrf.mxu2  ;;  %v1142_v21 = vpop.f32.mrf.mxu0 }
 0x160   : > { %v792_v46 = vadd.f32 %v710_v33, %v531_v32  ;;  %v2566_v32 = vld [vmem:[%s2990_s26 + $0x10b] sm:$0xff] }
 0x161   : > { %v533_v50 = vpop.f32.mrf.mxu1  ;;  %v926_v54 = vpop.f32.mrf.mxu3 }
 0x162   : > { %v1008_v60 = vadd.f32 %v926_v54, %v792_v46  ;;  %1189 = vmatmul.f32.gmra.mxu0 %v2564_v39  ;;  %v534_v4 = vadd.f32 %v533_v50, %v3383_v9  ;;  %v2779_v9 = vld [vmem:[%s3945_s1 + $0x400] sm:$0xff] }
 0x163   : > { %1965 = vmatpush.msra.mxu0 %v2779_v9  ;;  %v274_v46 = vld [vmem:[%s2990_s26 + $0x100] sm:$0xff] }
 0x164   : > { %v3612_v36 = vadd.f32 %v1142_v21, %v1008_v60  ;;  %580 = vmatmul.f32.gmra.mxu1 %v272_v59  ;;  %760 = vmatmul.f32.gmra.mxu2 %v2511_v29 }
 0x166   : > { %976 = vmatmul.f32.gmra.mxu3 %v2513_v3 }
 0x167   : > { %v713_v48 = vpop.f32.mrf.mxu2  ;;  %v1145_v0 = vpop.f32.mrf.mxu0 }
 0x168   : > { %v793_v31 = vadd.f32 %v713_v48, %v534_v4  ;;  %v275_v48 = vld [vmem:[%s2990_s26 + $0x108] sm:$0xff] }
 0x169   : > { %v536_v29 = vpop.f32.mrf.mxu1  ;;  %v929_v12 = vpop.f32.mrf.mxu3 }
 0x16a   : > { %v1009_v15 = vadd.f32 %v929_v12, %v793_v31  ;;  %1192 = vmatmul.f32.gmra.mxu0 %v2565_v11  ;;  %v537_v23 = vadd.f32 %v536_v29, %v3403_v19  ;;  %v2516_v11 = vld [vmem:[%s2990_s26 + $0x11a] sm:$0xff] }
 0x16b   : > { %v2568_v12 = vld [vmem:[%s2990_s26 + $0x11b] sm:$0xff] }
 0x16c   : > { %v3624_v18 = vadd.f32 %v1145_v0, %v1009_v15  ;;  %583 = vmatmul.f32.gmra.mxu1 %v273_v14  ;;  %763 = vmatmul.f32.gmra.mxu2 %v2512_v17  ;;  %v2515_v17 = vld [vmem:[%s2990_s26 + $0x112] sm:$0xff] }
 0x16e   : > { %979 = vmatmul.f32.gmra.mxu3 %v2514_v37 }
 0x16f   : > { %v716_v26 = vpop.f32.mrf.mxu2  ;;  %v1148_v8 = vpop.f32.mrf.mxu0 }
 0x170   : > { %v794_v33 = vadd.f32 %v716_v26, %v537_v23  ;;  %v276_v23 = vld [vmem:[%s2990_s26 + $0x110] sm:$0xff] }
 0x171   : > { %v539_v21 = vpop.f32.mrf.mxu1  ;;  %v932_v39 = vpop.f32.mrf.mxu3 }
 0x172   : > { %v1010_v50 = vadd.f32 %v932_v39, %v794_v33  ;;  %1195 = vmatmul.f32.gmra.mxu0 %v2566_v32  ;;  %v540_v19 = vadd.f32 %v539_v21, %v3417_v27  ;;  %v2569_v21 = vld [vmem:[%s2990_s26 + $0x123] sm:$0xff] }
 0x174   : > { %v3633_v54 = vadd.f32 %v1148_v8, %v1010_v50  ;;  %586 = vmatmul.f32.gmra.mxu1 %v274_v46  ;;  %766 = vmatmul.f32.gmra.mxu2 %v2513_v3  ;;  %v2517_v8 = vld [vmem:[%s2990_s26 + $0x122] sm:$0xff] }
 0x176   : > { %982 = vmatmul.f32.gmra.mxu3 %v2515_v17 }
 0x177   : > { %v719_v59 = vpop.f32.mrf.mxu2  ;;  %v1151_v60 = vpop.f32.mrf.mxu0 }
 0x178   : > { %v795_v1 = vadd.f32 %v719_v59, %v540_v19  ;;  %v277_v19 = vld [vmem:[%s2990_s26 + $0x118] sm:$0xff] }
 0x179   : > { %v542_v4 = vpop.f32.mrf.mxu1  ;;  %v935_v5 = vpop.f32.mrf.mxu3 }
 0x17a   : > { %v1011_v0 = vadd.f32 %v935_v5, %v795_v1  ;;  %1198 = vmatmul.f32.gmra.mxu0 %v2567_v25  ;;  %v543_v27 = vadd.f32 %v542_v4, %v3437_v42  ;;  %v2570_v4 = vld [vmem:[%s2990_s26 + $0x12b] sm:$0xff] }
 0x17c   : > { %v3639_v31 = vadd.f32 %v1151_v60, %v1011_v0  ;;  %589 = vmatmul.f32.gmra.mxu1 %v275_v48  ;;  %769 = vmatmul.f32.gmra.mxu2 %v2514_v37  ;;  %v2518_v60 = vld [vmem:[%s2990_s26 + $0x12a] sm:$0xff] }
 0x17e   : > { %985 = vmatmul.f32.gmra.mxu3 %v2516_v11 }
 0x17f   : > { %v722_v3 = vpop.f32.mrf.mxu2  ;;  %v1154_v29 = vpop.f32.mrf.mxu0 }
 0x180   : > { %v796_v14 = vadd.f32 %v722_v3, %v543_v27  ;;  %v2587_v27 = vld [vmem:[%s2990_s26 + $0x14] sm:$0xff]  ;;  %v2639_v3 = vld [vmem:[%s2990_s26 + $0x24] sm:$0xff] }
 0x181   : > { %v545_v15 = vpop.f32.mrf.mxu1  ;;  %v938_v9 = vpop.f32.mrf.mxu3 }
 0x182   : > { %v1012_v26 = vadd.f32 %v938_v9, %v796_v14  ;;  %1201 = vmatmul.f32.gmra.mxu0 %v2568_v12  ;;  %v546_v42 = vadd.f32 %v545_v15, %v3313_v35  ;;  %v2691_v12 = vld [vmem:[%s2990_s26 + $0x25] sm:$0xff] }
 0x183   : > { %v2743_v9 = vld [vmem:[%s2990_s26 + $0x26] sm:$0xff] }
 0x184   : > { %v3645_v32 = vadd.f32 %v1154_v29, %v1012_v26  ;;  %592 = vmatmul.f32.gmra.mxu1 %v276_v23  ;;  %772 = vmatmul.f32.gmra.mxu2 %v2515_v17 }
 0x186   : > { %988 = vmatmul.f32.gmra.mxu3 %v2517_v8 }
 0x187   : > { %v725_v37 = vpop.f32.mrf.mxu2  ;;  %v1157_v33 = vpop.f32.mrf.mxu0 }
 0x188   : > { %v797_v39 = vadd.f32 %v725_v37, %v546_v42  ;;  %v2588_v42 = vld [vmem:[%s2990_s26 + $0x1c] sm:$0xff]  ;;  %v2640_v37 = vld [vmem:[%s2990_s26 + $0x2c] sm:$0xff] }
 0x189   : > { %v548_v46 = vpop.f32.mrf.mxu1  ;;  %v941_v50 = vpop.f32.mrf.mxu3 }
 0x18a   : > { %v1013_v59 = vadd.f32 %v941_v50, %v797_v39  ;;  %1204 = vmatmul.f32.gmra.mxu0 %v2569_v21  ;;  %v549_v35 = vadd.f32 %v548_v46, %v3330_v44  ;;  %v2692_v21 = vld [vmem:[%s2990_s26 + $0x2d] sm:$0xff] }
 0x18c   : > { %v3651_v25 = vadd.f32 %v1157_v33, %v1013_v59  ;;  %595 = vmatmul.f32.gmra.mxu1 %v277_v19  ;;  %775 = vmatmul.f32.gmra.mxu2 %v2516_v11  ;;  %v2744_v19 = vld [vmem:[%s2990_s26 + $0x2e] sm:$0xff] }
 0x18e   : > { %991 = vmatmul.f32.gmra.mxu3 %v2518_v60 }
 0x18f   : > { %v728_v17 = vpop.f32.mrf.mxu2  ;;  %v1160_v1 = vpop.f32.mrf.mxu0 }
 0x190   : > { %v798_v5 = vadd.f32 %v728_v17, %v549_v35  ;;  %v2641_v17 = vld [vmem:[%s2990_s26 + $0x34] sm:$0xff] }
 0x191   : > { %v551_v48 = vpop.f32.mrf.mxu1  ;;  %v944_v0 = vpop.f32.mrf.mxu3 }
 0x192   : > { %v1014_v29 = vadd.f32 %v944_v0, %v798_v5  ;;  %1207 = vmatmul.f32.gmra.mxu0 %v2570_v4  ;;  %v552_v44 = vadd.f32 %v551_v48, %v3344_v52  ;;  %v2693_v4 = vld [vmem:[%s2990_s26 + $0x35] sm:$0xff] }
 0x194   : > { %v3658_v14 = vadd.f32 %v1160_v1, %v1014_v29  ;;  %1318 = vmatmul.f32.vlgmr.msra.gmra.mxu1 %v2587_v27  ;;  %1534 = vmatmul.f32.vlgmr.msra.gmra.mxu2 %v2639_v3  ;;  %v2745_v27 = vld [vmem:[%s2990_s26 + $0x36] sm:$0xff] }
 0x196   : > { %1750 = vmatmul.f32.vlgmr.msra.gmra.mxu3 %v2691_v12 }
 0x197   : > { %v731_v11 = vpop.f32.mrf.mxu2  ;;  %v1163_v15 = vpop.f32.mrf.mxu0 }
 0x198   : > { %v799_v23 = vadd.f32 %v731_v11, %v552_v44  ;;  %v2642_v11 = vld [vmem:[%s2990_s26 + $0x3c] sm:$0xff] }
 0x199   : > { %v554_v26 = vpop.f32.mrf.mxu1  ;;  %v947_v8 = vpop.f32.mrf.mxu3 }
 0x19a   : > { %v1015_v33 = vadd.f32 %v947_v8, %v799_v23  ;;  %1966 = vmatmul.f32.vlgmr.msra.gmra.mxu0 %v2743_v9  ;;  %v555_v52 = vadd.f32 %v554_v26, %v3364_v62  ;;  %v2694_v9 = vld [vmem:[%s2990_s26 + $0x3d] sm:$0xff] }
 0x19b   : > { %v2746_v8 = vld [vmem:[%s2990_s26 + $0x3e] sm:$0xff] }
 0x19c   : > { %v3665_v39 = vadd.f32 %v1163_v15, %v1015_v33  ;;  %1321 = vmatmul.f32.gmra.mxu1 %v2588_v42  ;;  %1537 = vmatmul.f32.gmra.mxu2 %v2640_v37 }
 0x19e   : > { %1753 = vmatmul.f32.gmra.mxu3 %v2692_v21 }
 0x19f   : > { %v734_v46 = vpop.f32.mrf.mxu2  ;;  %v1166_v50 = vpop.f32.mrf.mxu0 }
 0x1a0   : > { %v800_v59 = vadd.f32 %v734_v46, %v555_v52  ;;  %v2643_v52 = vld [vmem:[%s2990_s26 + $0x44] sm:$0xff] }
 0x1a1   : > { %v557_v60 = vpop.f32.mrf.mxu1  ;;  %v950_v35 = vpop.f32.mrf.mxu3 }
 0x1a2   : > { %v1016_v1 = vadd.f32 %v950_v35, %v800_v59  ;;  %1969 = vmatmul.f32.gmra.mxu0 %v2744_v19  ;;  %v558_v62 = vadd.f32 %v557_v60, %v3378_v6  ;;  %v2747_v60 = vld [vmem:[%s2990_s26 + $0x46] sm:$0xff] }
 0x1a4   : > { %v3671_v5 = vadd.f32 %v1166_v50, %v1016_v1  ;;  %1324 = vmatmul.f32.gmra.mxu1 %v2639_v3  ;;  %1540 = vmatmul.f32.gmra.mxu2 %v2641_v17  ;;  %v2695_v50 = vld [vmem:[%s2990_s26 + $0x45] sm:$0xff] }
 0x1a6   : > { %1756 = vmatmul.f32.gmra.mxu3 %v2693_v4 }
 0x1a7   : > { %v737_v48 = vpop.f32.mrf.mxu2  ;;  %v1169_v0 = vpop.f32.mrf.mxu0 }
 0x1a8   : > { %v801_v29 = vadd.f32 %v737_v48, %v558_v62  ;;  %v2644_v62 = vld [vmem:[%s2990_s26 + $0x4c] sm:$0xff] }
 0x1a9   : > { %v560_v12 = vpop.f32.mrf.mxu1  ;;  %v953_v44 = vpop.f32.mrf.mxu3 }
 0x1aa   : > { %v1017_v15 = vadd.f32 %v953_v44, %v801_v29  ;;  %1972 = vmatmul.f32.gmra.mxu0 %v2745_v27  ;;  %v561_v6 = vadd.f32 %v560_v12, %v3398_v16  ;;  %v2748_v12 = vld [vmem:[%s2990_s26 + $0x4e] sm:$0xff] }
 0x1ac   : > { %v3677_v23 = vadd.f32 %v1169_v0, %v1017_v15  ;;  %1327 = vmatmul.f32.gmra.mxu1 %v2640_v37  ;;  %1543 = vmatmul.f32.gmra.mxu2 %v2642_v11  ;;  %v2696_v0 = vld [vmem:[%s2990_s26 + $0x4d] sm:$0xff] }
 0x1ae   : > { %1759 = vmatmul.f32.gmra.mxu3 %v2694_v9 }
 0x1af   : > { %v740_v3 = vpop.f32.mrf.mxu2  ;;  %v1172_v26 = vpop.f32.mrf.mxu0 }
 0x1b0   : > { %v802_v42 = vadd.f32 %v740_v3, %v561_v6  ;;  %v2645_v6 = vld [vmem:[%s2990_s26 + $0x54] sm:$0xff] }
 0x1b1   : > { %v563_v33 = vpop.f32.mrf.mxu1  ;;  %v956_v21 = vpop.f32.mrf.mxu3 }
 0x1b2   : > { %v1018_v46 = vadd.f32 %v956_v21, %v802_v42  ;;  %1975 = vmatmul.f32.gmra.mxu0 %v2746_v8  ;;  %v564_v16 = vadd.f32 %v563_v33, %v3412_v24  ;;  %v2749_v33 = vld [vmem:[%s2990_s26 + $0x56] sm:$0xff] }
 0x1b4   : > { %v3683_v19 = vadd.f32 %v1172_v26, %v1018_v46  ;;  %1330 = vmatmul.f32.gmra.mxu1 %v2641_v17  ;;  %1546 = vmatmul.f32.gmra.mxu2 %v2643_v52  ;;  %v2697_v26 = vld [vmem:[%s2990_s26 + $0x55] sm:$0xff] }
 0x1b6   : > { %1762 = vmatmul.f32.gmra.mxu3 %v2695_v50 }
 0x1b7   : > { %v743_v37 = vpop.f32.mrf.mxu2  ;;  %v1175_v59 = vpop.f32.mrf.mxu0 }
 0x1b8   : > { %v803_v35 = vadd.f32 %v743_v37, %v564_v16  ;;  %v2646_v16 = vld [vmem:[%s2990_s26 + $0x5c] sm:$0xff] }
 0x1b9   : > { %v566_v1 = vpop.f32.mrf.mxu1  ;;  %v959_v4 = vpop.f32.mrf.mxu3 }
 0x1ba   : > { %v1019_v48 = vadd.f32 %v959_v4, %v803_v35  ;;  %1978 = vmatmul.f32.gmra.mxu0 %v2747_v60  ;;  %v567_v24 = vadd.f32 %v566_v1, %v3429_v34  ;;  %v2750_v1 = vld [vmem:[%s2990_s26 + $0x5e] sm:$0xff] }
 0x1bc   : > { %v3689_v27 = vadd.f32 %v1175_v59, %v1019_v48  ;;  %1333 = vmatmul.f32.gmra.mxu1 %v2642_v11  ;;  %1549 = vmatmul.f32.gmra.mxu2 %v2644_v62  ;;  %v2698_v59 = vld [vmem:[%s2990_s26 + $0x5d] sm:$0xff] }
 0x1be   : > { %1765 = vmatmul.f32.gmra.mxu3 %v2696_v0 }
 0x1bf   : > { %v746_v17 = vpop.f32.mrf.mxu2  ;;  %v1178_v29 = vpop.f32.mrf.mxu0 }
 0x1c0   : > { %v804_v44 = vadd.f32 %v746_v17, %v567_v24  ;;  %v2647_v24 = vld [vmem:[%s2990_s26 + $0x64] sm:$0xff] }
 0x1c1   : > { %v569_v15 = vpop.f32.mrf.mxu1  ;;  %v962_v9 = vpop.f32.mrf.mxu3 }
 0x1c2   : > { %v1020_v3 = vadd.f32 %v962_v9, %v804_v44  ;;  %1981 = vmatmul.f32.gmra.mxu0 %v2748_v12  ;;  %v570_v34 = vadd.f32 %v569_v15, %v3446_v51  ;;  %v2751_v15 = vld [vmem:[%s2990_s26 + $0x66] sm:$0xff] }
 0x1c4   : > { %v3695_v8 = vadd.f32 %v1178_v29, %v1020_v3  ;;  %1336 = vmatmul.f32.gmra.mxu1 %v2643_v52  ;;  %1552 = vmatmul.f32.gmra.mxu2 %v2645_v6  ;;  %v2699_v29 = vld [vmem:[%s2990_s26 + $0x65] sm:$0xff] }
 0x1c6   : > { %1768 = vmatmul.f32.gmra.mxu3 %v2697_v26 }
 0x1c7   : > { %v749_v11 = vpop.f32.mrf.mxu2  ;;  %v1181_v42 = vpop.f32.mrf.mxu0 }
 0x1c8   : > { %v805_v21 = vadd.f32 %v749_v11, %v570_v34  ;;  %v2648_v34 = vld [vmem:[%s2990_s26 + $0x6c] sm:$0xff] }
 0x1c9   : > { %v572_v46 = vpop.f32.mrf.mxu1  ;;  %v965_v50 = vpop.f32.mrf.mxu3 }
 0x1ca   : > { %v1021_v37 = vadd.f32 %v965_v50, %v805_v21  ;;  %1984 = vmatmul.f32.gmra.mxu0 %v2749_v33  ;;  %v573_v51 = vadd.f32 %v572_v46, %v3323_v40  ;;  %v2752_v46 = vld [vmem:[%s2990_s26 + $0x6e] sm:$0xff] }
 0x1cc   : > { %v3701_v60 = vadd.f32 %v1181_v42, %v1021_v37  ;;  %1339 = vmatmul.f32.gmra.mxu1 %v2644_v62  ;;  %1555 = vmatmul.f32.gmra.mxu2 %v2646_v16  ;;  %v2700_v42 = vld [vmem:[%s2990_s26 + $0x6d] sm:$0xff] }
 0x1ce   : > { %1771 = vmatmul.f32.gmra.mxu3 %v2698_v59 }
 0x1cf   : > { %v752_v52 = vpop.f32.mrf.mxu2  ;;  %v1184_v35 = vpop.f32.mrf.mxu0 }
 0x1d0   : > { %v806_v4 = vadd.f32 %v752_v52, %v573_v51  ;;  %v2649_v51 = vld [vmem:[%s2990_s26 + $0x74] sm:$0xff] }
 0x1d1   : > { %v575_v48 = vpop.f32.mrf.mxu1  ;;  %v968_v0 = vpop.f32.mrf.mxu3 }
 0x1d2   : > { %v1022_v17 = vadd.f32 %v968_v0, %v806_v4  ;;  %1987 = vmatmul.f32.gmra.mxu0 %v2750_v1  ;;  %v576_v40 = vadd.f32 %v575_v48, %v3340_v49  ;;  %v2753_v48 = vld [vmem:[%s2990_s26 + $0x76] sm:$0xff] }
 0x1d4   : > { %v3707_v12 = vadd.f32 %v1184_v35, %v1022_v17  ;;  %1342 = vmatmul.f32.gmra.mxu1 %v2645_v6  ;;  %1558 = vmatmul.f32.gmra.mxu2 %v2647_v24  ;;  %v2701_v35 = vld [vmem:[%s2990_s26 + $0x75] sm:$0xff] }
 0x1d6   : > { %1774 = vmatmul.f32.gmra.mxu3 %v2699_v29 }
 0x1d7   : > { %v755_v62 = vpop.f32.mrf.mxu2  ;;  %v1187_v44 = vpop.f32.mrf.mxu0 }
 0x1d8   : > { %v807_v9 = vadd.f32 %v755_v62, %v576_v40  ;;  %v2650_v40 = vld [vmem:[%s2990_s26 + $0x7c] sm:$0xff] }
 0x1d9   : > { %v578_v3 = vpop.f32.mrf.mxu1  ;;  %v971_v26 = vpop.f32.mrf.mxu3 }
 0x1da   : > { %v1023_v11 = vadd.f32 %v971_v26, %v807_v9  ;;  %1990 = vmatmul.f32.gmra.mxu0 %v2751_v15  ;;  %v579_v49 = vadd.f32 %v578_v3, %v3354_v57  ;;  %v2754_v3 = vld [vmem:[%s2990_s26 + $0x7e] sm:$0xff] }
 0x1dc   : > { %v3713_v33 = vadd.f32 %v1187_v44, %v1023_v11  ;;  %1345 = vmatmul.f32.gmra.mxu1 %v2646_v16  ;;  %1561 = vmatmul.f32.gmra.mxu2 %v2648_v34  ;;  %v2702_v44 = vld [vmem:[%s2990_s26 + $0x7d] sm:$0xff] }
 0x1de   : > { %1777 = vmatmul.f32.gmra.mxu3 %v2700_v42 }
 0x1df   : > { %v758_v6 = vpop.f32.mrf.mxu2  ;;  %v1190_v21 = vpop.f32.mrf.mxu0 }
 0x1e0   : > { %v808_v50 = vadd.f32 %v758_v6, %v579_v49  ;;  %v2651_v49 = vld [vmem:[%s2990_s26 + $0x84] sm:$0xff] }
 0x1e1   : > { %v581_v37 = vpop.f32.mrf.mxu1  ;;  %v974_v59 = vpop.f32.mrf.mxu3 }
 0x1e2   : > { %v1024_v52 = vadd.f32 %v974_v59, %v808_v50  ;;  %1993 = vmatmul.f32.gmra.mxu0 %v2752_v46  ;;  %v582_v57 = vadd.f32 %v581_v37, %v3371_v2  ;;  %v2755_v37 = vld [vmem:[%s2990_s26 + $0x86] sm:$0xff] }
 0x1e4   : > { %v3719_v1 = vadd.f32 %v1190_v21, %v1024_v52  ;;  %1348 = vmatmul.f32.gmra.mxu1 %v2647_v24  ;;  %1564 = vmatmul.f32.gmra.mxu2 %v2649_v51  ;;  %v2703_v21 = vld [vmem:[%s2990_s26 + $0x85] sm:$0xff] }
 0x1e6   : > { %1780 = vmatmul.f32.gmra.mxu3 %v2701_v35 }
 0x1e7   : > { %v761_v16 = vpop.f32.mrf.mxu2  ;;  %v1193_v4 = vpop.f32.mrf.mxu0 }
 0x1e8   : > { %v809_v0 = vadd.f32 %v761_v16, %v582_v57  ;;  %v2652_v57 = vld [vmem:[%s2990_s26 + $0x8c] sm:$0xff] }
 0x1e9   : > { %v584_v17 = vpop.f32.mrf.mxu1  ;;  %v977_v29 = vpop.f32.mrf.mxu3 }
 0x1ea   : > { %v1025_v62 = vadd.f32 %v977_v29, %v809_v0  ;;  %1996 = vmatmul.f32.gmra.mxu0 %v2753_v48  ;;  %v585_v2 = vadd.f32 %v584_v17, %v3385_v10  ;;  %v2756_v17 = vld [vmem:[%s2990_s26 + $0x8e] sm:$0xff] }
 0x1ec   : > { %v3725_v15 = vadd.f32 %v1193_v4, %v1025_v62  ;;  %1351 = vmatmul.f32.gmra.mxu1 %v2648_v34  ;;  %1567 = vmatmul.f32.gmra.mxu2 %v2650_v40  ;;  %v2704_v4 = vld [vmem:[%s2990_s26 + $0x8d] sm:$0xff] }
 0x1ee   : > { %1783 = vmatmul.f32.gmra.mxu3 %v2702_v44 }
 0x1ef   : > { %v764_v24 = vpop.f32.mrf.mxu2  ;;  %v1196_v9 = vpop.f32.mrf.mxu0 }
 0x1f0   : > { %v810_v26 = vadd.f32 %v764_v24, %v585_v2  ;;  %v2653_v2 = vld [vmem:[%s2990_s26 + $0x94] sm:$0xff] }
 0x1f1   : > { %v587_v11 = vpop.f32.mrf.mxu1  ;;  %v980_v42 = vpop.f32.mrf.mxu3 }
 0x1f2   : > { %v1026_v6 = vadd.f32 %v980_v42, %v810_v26  ;;  %1999 = vmatmul.f32.gmra.mxu0 %v2754_v3  ;;  %v588_v10 = vadd.f32 %v587_v11, %v3405_v20  ;;  %v2757_v11 = vld [vmem:[%s2990_s26 + $0x96] sm:$0xff] }
 0x1f4   : > { %v3731_v46 = vadd.f32 %v1196_v9, %v1026_v6  ;;  %1354 = vmatmul.f32.gmra.mxu1 %v2649_v51  ;;  %1570 = vmatmul.f32.gmra.mxu2 %v2651_v49  ;;  %v2705_v9 = vld [vmem:[%s2990_s26 + $0x95] sm:$0xff] }
 0x1f6   : > { %1786 = vmatmul.f32.gmra.mxu3 %v2703_v21 }
 0x1f7   : > { %v767_v34 = vpop.f32.mrf.mxu2  ;;  %v1199_v50 = vpop.f32.mrf.mxu0 }
 0x1f8   : > { %v811_v59 = vadd.f32 %v767_v34, %v588_v10  ;;  %v2654_v10 = vld [vmem:[%s2990_s26 + $0x9c] sm:$0xff] }
 0x1f9   : > { %v590_v52 = vpop.f32.mrf.mxu1  ;;  %v983_v35 = vpop.f32.mrf.mxu3 }
 0x1fa   : > { %v1027_v16 = vadd.f32 %v983_v35, %v811_v59  ;;  %2002 = vmatmul.f32.gmra.mxu0 %v2755_v37  ;;  %v591_v20 = vadd.f32 %v590_v52, %v3419_v28  ;;  %v2758_v52 = vld [vmem:[%s2990_s26 + $0x9e] sm:$0xff] }
 0x1fc   : > { %v3737_v48 = vadd.f32 %v1199_v50, %v1027_v16  ;;  %1357 = vmatmul.f32.gmra.mxu1 %v2650_v40  ;;  %1573 = vmatmul.f32.gmra.mxu2 %v2652_v57  ;;  %v2706_v50 = vld [vmem:[%s2990_s26 + $0x9d] sm:$0xff] }
 0x1fe   : > { %1789 = vmatmul.f32.gmra.mxu3 %v2704_v4 }
 0x1ff   : > { %v770_v51 = vpop.f32.mrf.mxu2  ;;  %v1202_v0 = vpop.f32.mrf.mxu0 }
 0x200   : > { %v812_v29 = vadd.f32 %v770_v51, %v591_v20  ;;  %v2655_v20 = vld [vmem:[%s2990_s26 + $0xa4] sm:$0xff] }
 0x201   : > { %v593_v62 = vpop.f32.mrf.mxu1  ;;  %v986_v44 = vpop.f32.mrf.mxu3 }
 0x202   : > { %v1028_v24 = vadd.f32 %v986_v44, %v812_v29  ;;  %2005 = vmatmul.f32.gmra.mxu0 %v2756_v17  ;;  %v594_v28 = vadd.f32 %v593_v62, %v3439_v43  ;;  %v2759_v62 = vld [vmem:[%s2990_s26 + $0xa6] sm:$0xff] }
 0x204   : > { %v3743_v3 = vadd.f32 %v1202_v0, %v1028_v24  ;;  %1360 = vmatmul.f32.gmra.mxu1 %v2651_v49  ;;  %1576 = vmatmul.f32.gmra.mxu2 %v2653_v2  ;;  %v2707_v0 = vld [vmem:[%s2990_s26 + $0xa5] sm:$0xff] }
 0x206   : > { %1792 = vmatmul.f32.gmra.mxu3 %v2705_v9 }
 0x207   : > { %v773_v40 = vpop.f32.mrf.mxu2  ;;  %v1205_v26 = vpop.f32.mrf.mxu0 }
 0x208   : > { %v813_v42 = vadd.f32 %v773_v40, %v594_v28  ;;  %v2656_v28 = vld [vmem:[%s2990_s26 + $0xac] sm:$0xff] }
 0x209   : > { %v596_v6 = vpop.f32.mrf.mxu1  ;;  %v989_v21 = vpop.f32.mrf.mxu3 }
 0x20a   : > { %v1029_v34 = vadd.f32 %v989_v21, %v813_v42  ;;  %2008 = vmatmul.f32.gmra.mxu0 %v2757_v11  ;;  %v597_v43 = vadd.f32 %v596_v6, %v3451_v58 }
 0x20c   : > { %v3749_v37 = vadd.f32 %v1205_v26, %v1029_v34  ;;  %1363 = vmatmul.f32.gmra.mxu1 %v2652_v57  ;;  %1579 = vmatmul.f32.gmra.mxu2 %v2654_v10  ;;  %v3763_v26 = vld [vmem:[%s3946_s2] ss:$0 sm:$0xff]  ;;  %v2760_v34 = vld [vmem:[%s2990_s26 + $0xae] sm:$0xff] }
 0x20e   : > { %1795 = vmatmul.f32.gmra.mxu3 %v2706_v50 }
 0x20f   : > { %v776_v49 = vpop.f32.mrf.mxu2  ;;  %v1208_v59 = vpop.f32.mrf.mxu0 }
 0x210   : > { %v814_v35 = vadd.f32 %v776_v49, %v597_v43 }
 0x211   : > { %v992_v16 = vpop.f32.mrf.mxu3  ;;  %v1319_v4 = vpop.f32.mrf.mxu1 }
 0x212   : > { %v1030_v51 = vadd.f32 %v992_v16, %v814_v35  ;;  %2011 = vmatmul.f32.gmra.mxu0 %v2758_v52  ;;  %v1427_v58 = vadd.f32 %v1319_v4, %v3468_v22  ;;  %v2709_v52 = vld [vmem:[%s2990_s26 + $0xb5] sm:$0xff] }
 0x214   : > { %v3755_v17 = vadd.f32 %v1208_v59, %v1030_v51  ;;  %1366 = vmatmul.f32.gmra.mxu1 %v2653_v2  ;;  %1582 = vmatmul.f32.gmra.mxu2 %v2655_v20  ;;  %v2708_v2 = vld [vmem:[%s2990_s26 + $0xad] sm:$0xff] }
 0x215   : > { %v2657_v59 = vld [vmem:[%s2990_s26 + $0xb4] sm:$0xff] }
 0x216   : > { %1798 = vmatmul.f32.gmra.mxu3 %v2707_v0 }
 0x217   : > { %v1535_v57 = vpop.f32.mrf.mxu2  ;;  %v1967_v29 = vpop.f32.mrf.mxu0 }
 0x218   : > { %v1643_v44 = vadd.f32 %v1535_v57, %v1427_v58  ;;  %v2761_v58 = vld [vmem:[%s2990_s26 + $0xb6] sm:$0xff] }
 0x219   : > { %v1322_v24 = vpop.f32.mrf.mxu1  ;;  %v1751_v9 = vpop.f32.mrf.mxu3 }
 0x21a   : > { %v1859_v40 = vadd.f32 %v1751_v9, %v1643_v44  ;;  %2014 = vmatmul.f32.gmra.mxu0 %v2759_v62  ;;  %v1428_v11 = vadd.f32 %v1322_v24, %v3477_v55  ;;  %v2658_v24 = vld [vmem:[%s2990_s26 + $0xbc] sm:$0xff] }
 0x21c   : > { %v2075_v22 = vadd.f32 %v1967_v29, %v1859_v40  ;;  %1369 = vmatmul.f32.gmra.mxu1 %v2654_v10  ;;  %1585 = vmatmul.f32.gmra.mxu2 %v2656_v28 }
 0x21e   : > { %v2115_v42 = vadd.f32 %v3763_v26, %v2075_v22  ;;  %1801 = vmatmul.f32.gmra.mxu3 %v2708_v2 }
 0x21f   : > { %v1538_v6 = vpop.f32.mrf.mxu2  ;;  %v1970_v21 = vpop.f32.mrf.mxu0 }
 0x220   : > { %v2151_v50 = vmax.f32 %v2115_v42, 0.0  ;;  %v1644_v43 = vadd.f32 %v1538_v6, %v1428_v11  ;;  %v2762_v42 = vld [vmem:[%s2990_s26 + $0xbe] sm:$0xff] }
 0x221   : > { %v1325_v10 = vpop.f32.mrf.mxu1  ;;  %v1754_v49 = vpop.f32.mrf.mxu3 }
 0x222   : > { %2187 = vst [vmem:[%s3772_s25] sm:$0xff] %v2151_v50  ;;  %v1860_v55 = vadd.f32 %v1754_v49, %v1644_v43  ;;  %2017 = vmatmul.f32.gmra.mxu0 %v2760_v34  ;;  %v1429_v16 = vadd.f32 %v1325_v10, %v3489_v13  ;;  %v2659_v43 = vld [vmem:[%s2990_s26 + $0xc4] sm:$0xff] }
 0x224   : > { %v2076_v35 = vadd.f32 %v1970_v21, %v1860_v55  ;;  %1372 = vmatmul.f32.gmra.mxu1 %v2655_v20  ;;  %1588 = vmatmul.f32.gmra.mxu2 %v2657_v59  ;;  %v2710_v20 = vld [vmem:[%s2990_s26 + $0xbd] sm:$0xff] }
 0x226   : > { %v2116_v4 = vadd.f32 %v3763_v26, %v2076_v35  ;;  %1804 = vmatmul.f32.gmra.mxu3 %v2709_v52 }
 0x227   : > { %v1541_v51 = vpop.f32.mrf.mxu2  ;;  %v1973_v0 = vpop.f32.mrf.mxu0 }
 0x228   : > { %v2152_v57 = vmax.f32 %v2116_v4, 0.0  ;;  %v1645_v29 = vadd.f32 %v1541_v51, %v1429_v16  ;;  %v2763_v16 = vld [vmem:[%s2990_s26 + $0xc6] sm:$0xff] }
 0x229   : > { %v1328_v62 = vpop.f32.mrf.mxu1  ;;  %v1757_v44 = vpop.f32.mrf.mxu3 }
 0x22a   : > { %2188 = vst [vmem:[%s3772_s25 + $0x8] sm:$0xff] %v2152_v57  ;;  %v1861_v9 = vadd.f32 %v1757_v44, %v1645_v29  ;;  %2020 = vmatmul.f32.gmra.mxu0 %v2761_v58  ;;  %v1430_v13 = vadd.f32 %v1328_v62, %v3501_v63  ;;  %v2660_v57 = vld [vmem:[%s2990_s26 + $0xcc] sm:$0xff] }
 0x22c   : > { %v2077_v40 = vadd.f32 %v1973_v0, %v1861_v9  ;;  %1375 = vmatmul.f32.gmra.mxu1 %v2656_v28  ;;  %1591 = vmatmul.f32.gmra.mxu2 %v2658_v24  ;;  %v2711_v28 = vld [vmem:[%s2990_s26 + $0xc5] sm:$0xff] }
 0x22e   : > { %v2117_v2 = vadd.f32 %v3763_v26, %v2077_v40  ;;  %1807 = vmatmul.f32.gmra.mxu3 %v2710_v20  ;;  %v2764_v40 = vld [vmem:[%s2990_s26 + $0xce] sm:$0xff] }
 0x22f   : > { %v1544_v22 = vpop.f32.mrf.mxu2  ;;  %v1976_v11 = vpop.f32.mrf.mxu0 }
 0x230   : > { %v2153_v6 = vmax.f32 %v2117_v2, 0.0  ;;  %v1646_v21 = vadd.f32 %v1544_v22, %v1430_v13 }
 0x231   : > { %v1331_v34 = vpop.f32.mrf.mxu1  ;;  %v1760_v50 = vpop.f32.mrf.mxu3 }
 0x232   : > { %2189 = vst [vmem:[%s3772_s25 + $0x10] sm:$0xff] %v2153_v6  ;;  %v1862_v10 = vadd.f32 %v1760_v50, %v1646_v21  ;;  %2023 = vmatmul.f32.gmra.mxu0 %v2762_v42  ;;  %v1431_v63 = vadd.f32 %v1331_v34, %v3510_v47  ;;  %v2661_v42 = vld [vmem:[%s2990_s26 + $0xd4] sm:$0xff] }
 0x234   : > { %v2078_v49 = vadd.f32 %v1976_v11, %v1862_v10  ;;  %1378 = vmatmul.f32.gmra.mxu1 %v2657_v59  ;;  %1594 = vmatmul.f32.gmra.mxu2 %v2659_v43  ;;  %v2712_v59 = vld [vmem:[%s2990_s26 + $0xcd] sm:$0xff] }
 0x236   : > { %v2118_v55 = vadd.f32 %v3763_v26, %v2078_v49  ;;  %1810 = vmatmul.f32.gmra.mxu3 %v2711_v28  ;;  %v2765_v28 = vld [vmem:[%s2990_s26 + $0xd6] sm:$0xff] }
 0x237   : > { %v1547_v52 = vpop.f32.mrf.mxu2  ;;  %v1979_v35 = vpop.f32.mrf.mxu0 }
 0x238   : > { %v2154_v4 = vmax.f32 %v2118_v55, 0.0  ;;  %v1647_v51 = vadd.f32 %v1547_v52, %v1431_v63 }
 0x239   : > { %v1334_v0 = vpop.f32.mrf.mxu1  ;;  %v1763_v58 = vpop.f32.mrf.mxu3 }
 0x23a   : > { %2190 = vst [vmem:[%s3772_s25 + $0x18] sm:$0xff] %v2154_v4  ;;  %v1863_v29 = vadd.f32 %v1763_v58, %v1647_v51  ;;  %2026 = vmatmul.f32.gmra.mxu0 %v2763_v16  ;;  %v1432_v47 = vadd.f32 %v1334_v0, %v3522_v30 }
 0x23c   : > { %v2079_v62 = vadd.f32 %v1979_v35, %v1863_v29  ;;  %1381 = vmatmul.f32.gmra.mxu1 %v2658_v24  ;;  %1597 = vmatmul.f32.gmra.mxu2 %v2660_v57  ;;  %v2713_v24 = vld [vmem:[%s2990_s26 + $0xd5] sm:$0xff]  ;;  %v2766_v29 = vld [vmem:[%s2990_s26 + $0xde] sm:$0xff] }
 0x23d   : > { %v2662_v35 = vld [vmem:[%s2990_s26 + $0xdc] sm:$0xff] }
 0x23e   : > { %v2119_v44 = vadd.f32 %v3763_v26, %v2079_v62  ;;  %1813 = vmatmul.f32.gmra.mxu3 %v2712_v59 }
 0x23f   : > { %v1550_v9 = vpop.f32.mrf.mxu2  ;;  %v1982_v20 = vpop.f32.mrf.mxu0 }
 0x240   : > { %v2155_v13 = vmax.f32 %v2119_v44, 0.0  ;;  %v1648_v2 = vadd.f32 %v1550_v9, %v1432_v47  ;;  %v2663_v9 = vld [vmem:[%s2990_s26 + $0xe4] sm:$0xff] }
 0x241   : > { %v1337_v22 = vpop.f32.mrf.mxu1  ;;  %v1766_v11 = vpop.f32.mrf.mxu3 }
 0x242   : > { %2191 = vst [vmem:[%s3772_s25 + $0x20] sm:$0xff] %v2155_v13  ;;  %v1864_v6 = vadd.f32 %v1766_v11, %v1648_v2  ;;  %2029 = vmatmul.f32.gmra.mxu0 %v2764_v40  ;;  %v1433_v30 = vadd.f32 %v1337_v22, %v3531_v38  ;;  %v2767_v11 = vld [vmem:[%s2990_s26 + $0xe6] sm:$0xff] }
 0x244   : > { %v2080_v21 = vadd.f32 %v1982_v20, %v1864_v6  ;;  %1384 = vmatmul.f32.gmra.mxu1 %v2659_v43  ;;  %1600 = vmatmul.f32.gmra.mxu2 %v2661_v42  ;;  %v2714_v43 = vld [vmem:[%s2990_s26 + $0xdd] sm:$0xff] }
 0x246   : > { %v2120_v34 = vadd.f32 %v3763_v26, %v2080_v21  ;;  %1816 = vmatmul.f32.gmra.mxu3 %v2713_v24 }
 0x247   : > { %v1553_v50 = vpop.f32.mrf.mxu2  ;;  %v1985_v10 = vpop.f32.mrf.mxu0 }
 0x248   : > { %v2156_v49 = vmax.f32 %v2120_v34, 0.0  ;;  %v1649_v63 = vadd.f32 %v1553_v50, %v1433_v30  ;;  %v2664_v34 = vld [vmem:[%s2990_s26 + $0xec] sm:$0xff] }
 0x249   : > { %v1340_v55 = vpop.f32.mrf.mxu1  ;;  %v1769_v52 = vpop.f32.mrf.mxu3 }
 0x24a   : > { %2192 = vst [vmem:[%s3772_s25 + $0x28] sm:$0xff] %v2156_v49  ;;  %v1865_v16 = vadd.f32 %v1769_v52, %v1649_v63  ;;  %2032 = vmatmul.f32.gmra.mxu0 %v2765_v28  ;;  %v1434_v38 = vadd.f32 %v1340_v55, %v3546_v61  ;;  %v2768_v55 = vld [vmem:[%s2990_s26 + $0xee] sm:$0xff] }
 0x24c   : > { %v2081_v4 = vadd.f32 %v1985_v10, %v1865_v16  ;;  %1387 = vmatmul.f32.gmra.mxu1 %v2660_v57  ;;  %1603 = vmatmul.f32.gmra.mxu2 %v2662_v35  ;;  %v2715_v57 = vld [vmem:[%s2990_s26 + $0xe5] sm:$0xff] }
 0x24e   : > { %v2121_v51 = vadd.f32 %v3763_v26, %v2081_v4  ;;  %1819 = vmatmul.f32.gmra.mxu3 %v2714_v43 }
 0x24f   : > { %v1556_v0 = vpop.f32.mrf.mxu2  ;;  %v1988_v58 = vpop.f32.mrf.mxu0 }
 0x250   : > { %v2157_v59 = vmax.f32 %v2121_v51, 0.0  ;;  %v1650_v62 = vadd.f32 %v1556_v0, %v1434_v38  ;;  %v2665_v38 = vld [vmem:[%s2990_s26 + $0xf4] sm:$0xff] }
 0x251   : > { %v1343_v47 = vpop.f32.mrf.mxu1  ;;  %v1772_v44 = vpop.f32.mrf.mxu3 }
 0x252   : > { %2193 = vst [vmem:[%s3772_s25 + $0x30] sm:$0xff] %v2157_v59  ;;  %v1866_v20 = vadd.f32 %v1772_v44, %v1650_v62  ;;  %2035 = vmatmul.f32.gmra.mxu0 %v2766_v29  ;;  %v1435_v61 = vadd.f32 %v1343_v47, %v3555_v45  ;;  %v2769_v62 = vld [vmem:[%s2990_s26 + $0xf6] sm:$0xff] }
 0x254   : > { %v2082_v40 = vadd.f32 %v1988_v58, %v1866_v20  ;;  %1390 = vmatmul.f32.gmra.mxu1 %v2661_v42  ;;  %1606 = vmatmul.f32.gmra.mxu2 %v2663_v9  ;;  %v2716_v42 = vld [vmem:[%s2990_s26 + $0xed] sm:$0xff] }
 0x256   : > { %v2122_v13 = vadd.f32 %v3763_v26, %v2082_v40  ;;  %1822 = vmatmul.f32.gmra.mxu3 %v2715_v57  ;;  %v2666_v40 = vld [vmem:[%s2990_s26 + $0xfc] sm:$0xff] }
 0x257   : > { %v1559_v2 = vpop.f32.mrf.mxu2  ;;  %v1991_v22 = vpop.f32.mrf.mxu0 }
 0x258   : > { %v2158_v6 = vmax.f32 %v2122_v13, 0.0  ;;  %v1651_v24 = vadd.f32 %v1559_v2, %v1435_v61 }
 0x259   : > { %v1346_v21 = vpop.f32.mrf.mxu1  ;;  %v1775_v30 = vpop.f32.mrf.mxu3 }
 0x25a   : > { %2194 = vst [vmem:[%s3772_s25 + $0x38] sm:$0xff] %v2158_v6  ;;  %v1867_v50 = vadd.f32 %v1775_v30, %v1651_v24  ;;  %2038 = vmatmul.f32.gmra.mxu0 %v2767_v11  ;;  %v1436_v45 = vadd.f32 %v1346_v21, %v3570_v53  ;;  %v2770_v6 = vld [vmem:[%s2990_s26 + $0xfe] sm:$0xff] }
 0x25c   : > { %v2083_v10 = vadd.f32 %v1991_v22, %v1867_v50  ;;  %1393 = vmatmul.f32.gmra.mxu1 %v2662_v35  ;;  %1609 = vmatmul.f32.gmra.mxu2 %v2664_v34  ;;  %v2717_v35 = vld [vmem:[%s2990_s26 + $0xf5] sm:$0xff] }
 0x25e   : > { %v2123_v28 = vadd.f32 %v3763_v26, %v2083_v10  ;;  %1825 = vmatmul.f32.gmra.mxu3 %v2716_v42  ;;  %v2667_v42 = vld [vmem:[%s2990_s26 + $0x104] sm:$0xff] }
 0x25f   : > { %v1562_v49 = vpop.f32.mrf.mxu2  ;;  %v1994_v63 = vpop.f32.mrf.mxu0 }
 0x260   : > { %v2159_v52 = vmax.f32 %v2123_v28, 0.0  ;;  %v1652_v16 = vadd.f32 %v1562_v49, %v1436_v45 }
 0x261   : > { %v1349_v43 = vpop.f32.mrf.mxu1  ;;  %v1778_v4 = vpop.f32.mrf.mxu3 }
 0x262   : > { %2195 = vst [vmem:[%s3772_s25 + $0x40] sm:$0xff] %v2159_v52  ;;  %v1868_v51 = vadd.f32 %v1778_v4, %v1652_v16  ;;  %2041 = vmatmul.f32.gmra.mxu0 %v2768_v55  ;;  %v1437_v53 = vadd.f32 %v1349_v43, %v3579_v41  ;;  %v2771_v55 = vld [vmem:[%s2990_s26 + $0x106] sm:$0xff] }
 0x264   : > { %v2084_v0 = vadd.f32 %v1994_v63, %v1868_v51  ;;  %1396 = vmatmul.f32.gmra.mxu1 %v2663_v9  ;;  %1612 = vmatmul.f32.gmra.mxu2 %v2665_v38  ;;  %v2718_v9 = vld [vmem:[%s2990_s26 + $0xfd] sm:$0xff]  ;;  %v2668_v51 = vld [vmem:[%s2990_s26 + $0x10c] sm:$0xff] }
 0x266   : > { %v2124_v58 = vadd.f32 %v3763_v26, %v2084_v0  ;;  %1828 = vmatmul.f32.gmra.mxu3 %v2717_v35 }
 0x267   : > { %v1565_v29 = vpop.f32.mrf.mxu2  ;;  %v1997_v59 = vpop.f32.mrf.mxu0 }
 0x268   : > { %v2160_v47 = vmax.f32 %v2124_v58, 0.0  ;;  %v1653_v44 = vadd.f32 %v1565_v29, %v1437_v53 }
 0x269   : > { %v1352_v20 = vpop.f32.mrf.mxu1  ;;  %v1781_v57 = vpop.f32.mrf.mxu3 }
 0x26a   : > { %2196 = vst [vmem:[%s3772_s25 + $0x48] sm:$0xff] %v2160_v47  ;;  %v1869_v61 = vadd.f32 %v1781_v57, %v1653_v44  ;;  %2044 = vmatmul.f32.gmra.mxu0 %v2769_v62  ;;  %v1438_v41 = vadd.f32 %v1352_v20, %v3591_v7  ;;  %v2669_v57 = vld [vmem:[%s2990_s26 + $0x114] sm:$0xff] }
 0x26c   : > { %v2085_v13 = vadd.f32 %v1997_v59, %v1869_v61  ;;  %1399 = vmatmul.f32.gmra.mxu1 %v2664_v34  ;;  %1615 = vmatmul.f32.gmra.mxu2 %v2666_v40  ;;  %v2719_v34 = vld [vmem:[%s2990_s26 + $0x105] sm:$0xff]  ;;  %v2772_v59 = vld [vmem:[%s2990_s26 + $0x10e] sm:$0xff] }
 0x26e   : > { %v2125_v2 = vadd.f32 %v3763_v26, %v2085_v13  ;;  %1831 = vmatmul.f32.gmra.mxu3 %v2718_v9 }
 0x26f   : > { %v1568_v22 = vpop.f32.mrf.mxu2  ;;  %v2000_v11 = vpop.f32.mrf.mxu0 }
 0x270   : > { %v2161_v24 = vmax.f32 %v2125_v2, 0.0  ;;  %v1654_v21 = vadd.f32 %v1568_v22, %v1438_v41  ;;  %v2773_v22 = vld [vmem:[%s2990_s26 + $0x116] sm:$0xff] }
 0x271   : > { %v1355_v30 = vpop.f32.mrf.mxu1  ;;  %v1784_v50 = vpop.f32.mrf.mxu3 }
 0x272   : > { %2197 = vst [vmem:[%s3772_s25 + $0x50] sm:$0xff] %v2161_v24  ;;  %v1870_v10 = vadd.f32 %v1784_v50, %v1654_v21  ;;  %2047 = vmatmul.f32.gmra.mxu0 %v2770_v6  ;;  %v1439_v7 = vadd.f32 %v1355_v30, %v3603_v56  ;;  %v2670_v30 = vld [vmem:[%s2990_s26 + $0x11c] sm:$0xff] }
 0x274   : > { %v2086_v45 = vadd.f32 %v2000_v11, %v1870_v10  ;;  %1402 = vmatmul.f32.gmra.mxu1 %v2665_v38  ;;  %1618 = vmatmul.f32.gmra.mxu2 %v2667_v42  ;;  %v2720_v38 = vld [vmem:[%s2990_s26 + $0x10d] sm:$0xff] }
 0x276   : > { %v2126_v28 = vadd.f32 %v3763_v26, %v2086_v45  ;;  %1834 = vmatmul.f32.gmra.mxu3 %v2719_v34 }
 0x277   : > { %v1571_v49 = vpop.f32.mrf.mxu2  ;;  %v2003_v63 = vpop.f32.mrf.mxu0 }
 0x278   : > { %v2162_v52 = vmax.f32 %v2126_v28, 0.0  ;;  %v1655_v16 = vadd.f32 %v1571_v49, %v1439_v7  ;;  %v2774_v28 = vld [vmem:[%s2990_s26 + $0x11e] sm:$0xff] }
 0x279   : > { %v1358_v43 = vpop.f32.mrf.mxu1  ;;  %v1787_v4 = vpop.f32.mrf.mxu3 }
 0x27a   : > { %2198 = vst [vmem:[%s3772_s25 + $0x58] sm:$0xff] %v2162_v52  ;;  %v1871_v35 = vadd.f32 %v1787_v4, %v1655_v16  ;;  %2050 = vmatmul.f32.gmra.mxu0 %v2771_v55  ;;  %v1440_v56 = vadd.f32 %v1358_v43, %v3612_v36  ;;  %v2671_v16 = vld [vmem:[%s2990_s26 + $0x124] sm:$0xff] }
 0x27b   : > { %v2723_v4 = vld [vmem:[%s2990_s26 + $0x125] sm:$0xff] }
 0x27c   : > { %v2087_v0 = vadd.f32 %v2003_v63, %v1871_v35  ;;  %1405 = vmatmul.f32.gmra.mxu1 %v2666_v40  ;;  %1621 = vmatmul.f32.gmra.mxu2 %v2668_v51  ;;  %v2721_v40 = vld [vmem:[%s2990_s26 + $0x115] sm:$0xff] }
 0x27e   : > { %v2127_v53 = vadd.f32 %v3763_v26, %v2087_v0  ;;  %1837 = vmatmul.f32.gmra.mxu3 %v2720_v38 }
 0x27f   : > { %v1574_v58 = vpop.f32.mrf.mxu2  ;;  %v2006_v29 = vpop.f32.mrf.mxu0 }
 0x280   : > { %v2163_v62 = vmax.f32 %v2127_v53, 0.0  ;;  %v1656_v47 = vadd.f32 %v1574_v58, %v1440_v56  ;;  %v2775_v56 = vld [vmem:[%s2990_s26 + $0x126] sm:$0xff] }
 0x281   : > { %v1361_v44 = vpop.f32.mrf.mxu1  ;;  %v1790_v20 = vpop.f32.mrf.mxu3 }
 0x282   : > { %2199 = vst [vmem:[%s3772_s25 + $0x60] sm:$0xff] %v2163_v62  ;;  %v1872_v61 = vadd.f32 %v1790_v20, %v1656_v47  ;;  %2053 = vmatmul.f32.gmra.mxu0 %v2772_v59  ;;  %v1441_v36 = vadd.f32 %v1361_v44, %v3624_v18  ;;  %v2672_v62 = vld [vmem:[%s2990_s26 + $0x12c] sm:$0xff] }
 0x283   : > { %v2724_v44 = vld [vmem:[%s2990_s26 + $0x12d] sm:$0xff] }
 0x284   : > { %v2088_v9 = vadd.f32 %v2006_v29, %v1872_v61  ;;  %1408 = vmatmul.f32.gmra.mxu1 %v2667_v42  ;;  %1624 = vmatmul.f32.gmra.mxu2 %v2669_v57  ;;  %v2722_v42 = vld [vmem:[%s2990_s26 + $0x11d] sm:$0xff] }
 0x286   : > { %v2128_v13 = vadd.f32 %v3763_v26, %v2088_v9  ;;  %1840 = vmatmul.f32.gmra.mxu3 %v2721_v40  ;;  %v2776_v9 = vld [vmem:[%s2990_s26 + $0x12e] sm:$0xff] }
 0x287   : > { %v1577_v41 = vpop.f32.mrf.mxu2  ;;  %v2009_v2 = vpop.f32.mrf.mxu0 }
 0x288   : > { %v2164_v11 = vmax.f32 %v2128_v13, 0.0  ;;  %v1657_v6 = vadd.f32 %v1577_v41, %v1441_v36 }
 0x289   : > { %v1364_v24 = vpop.f32.mrf.mxu1  ;;  %v1793_v21 = vpop.f32.mrf.mxu3 }
 0x28a   : > { %2200 = vst [vmem:[%s3772_s25 + $0x68] sm:$0xff] %v2164_v11  ;;  %v1873_v50 = vadd.f32 %v1793_v21, %v1657_v6  ;;  %2056 = vmatmul.f32.gmra.mxu0 %v2773_v22  ;;  %v1442_v18 = vadd.f32 %v1364_v24, %v3633_v54  ;;  %v2673_v22 = vld [vmem:[%s2990_s26 + $0x134] sm:$0xff] }
 0x28b   : > { %v2725_v6 = vld [vmem:[%s2990_s26 + $0x135] sm:$0xff] }
 0x28c   : > { %v2089_v10 = vadd.f32 %v2009_v2, %v1873_v50  ;;  %1411 = vmatmul.f32.gmra.mxu1 %v2668_v51  ;;  %1627 = vmatmul.f32.gmra.mxu2 %v2670_v30 }
 0x28e   : > { %v2129_v34 = vadd.f32 %v3763_v26, %v2089_v10  ;;  %1843 = vmatmul.f32.gmra.mxu3 %v2722_v42  ;;  %v2777_v42 = vld [vmem:[%s2990_s26 + $0x136] sm:$0xff] }
 0x28f   : > { %v1580_v45 = vpop.f32.mrf.mxu2  ;;  %v2012_v7 = vpop.f32.mrf.mxu0 }
 0x290   : > { %v2165_v49 = vmax.f32 %v2129_v34, 0.0  ;;  %v1658_v63 = vadd.f32 %v1580_v45, %v1442_v18 }
 0x291   : > { %v1367_v55 = vpop.f32.mrf.mxu1  ;;  %v1796_v52 = vpop.f32.mrf.mxu3 }
 0x292   : > { %2201 = vst [vmem:[%s3772_s25 + $0x70] sm:$0xff] %v2165_v49  ;;  %v1874_v43 = vadd.f32 %v1796_v52, %v1658_v63  ;;  %2059 = vmatmul.f32.gmra.mxu0 %v2774_v28  ;;  %v1443_v54 = vadd.f32 %v1367_v55, %v3639_v31  ;;  %v2726_v49 = vld [vmem:[%s2990_s26 + $0x13d] sm:$0xff] }
 0x294   : > { %v2090_v51 = vadd.f32 %v2012_v7, %v1874_v43  ;;  %1414 = vmatmul.f32.gmra.mxu1 %v2669_v57  ;;  %1630 = vmatmul.f32.gmra.mxu2 %v2671_v16  ;;  %v2674_v7 = vld [vmem:[%s2990_s26 + $0x13c] sm:$0xff] }
 0x295   : > { %v2778_v43 = vld [vmem:[%s2990_s26 + $0x13e] sm:$0xff] }
 0x296   : > { %v2130_v35 = vadd.f32 %v3763_v26, %v2090_v51  ;;  %1846 = vmatmul.f32.gmra.mxu3 %v2723_v4 }
 0x297   : > { %v1583_v38 = vpop.f32.mrf.mxu2  ;;  %v2015_v0 = vpop.f32.mrf.mxu0 }
 0x298   : > { %v2166_v53 = vmax.f32 %v2130_v35, 0.0  ;;  %v1659_v58 = vadd.f32 %v1583_v38, %v1443_v54 }
 0x299   : > { %v1370_v29 = vpop.f32.mrf.mxu1  ;;  %v1799_v59 = vpop.f32.mrf.mxu3 }
 0x29a   : > { %2202 = vst [vmem:[%s3772_s25 + $0x78] sm:$0xff] %v2166_v53  ;;  %v1875_v47 = vadd.f32 %v1799_v59, %v1659_v58  ;;  %2062 = vmatmul.f32.gmra.mxu0 %v2775_v56  ;;  %v1444_v31 = vadd.f32 %v1370_v29, %v3645_v32 }
 0x29c   : > { %v2091_v20 = vadd.f32 %v2015_v0, %v1875_v47  ;;  %1417 = vmatmul.f32.gmra.mxu1 %v2670_v30  ;;  %1633 = vmatmul.f32.gmra.mxu2 %v2672_v62 }
 0x29e   : > { %v2131_v57 = vadd.f32 %v3763_v26, %v2091_v20  ;;  %1849 = vmatmul.f32.gmra.mxu3 %v2724_v44 }
 0x29f   : > { %v1586_v61 = vpop.f32.mrf.mxu2  ;;  %v2018_v40 = vpop.f32.mrf.mxu0 }
 0x2a0   : > { %v2167_v36 = vmax.f32 %v2131_v57, 0.0  ;;  %v1660_v13 = vadd.f32 %v1586_v61, %v1444_v31 }
 0x2a1   : > { %v1373_v41 = vpop.f32.mrf.mxu1  ;;  %v1802_v2 = vpop.f32.mrf.mxu3 }
 0x2a2   : > { %2203 = vst [vmem:[%s3772_s25 + $0x80] sm:$0xff] %v2167_v36  ;;  %v1876_v11 = vadd.f32 %v1802_v2, %v1660_v13  ;;  %2065 = vmatmul.f32.gmra.mxu0 %v2776_v9  ;;  %v1445_v32 = vadd.f32 %v1373_v41, %v3651_v25 }
 0x2a4   : > { %v2092_v24 = vadd.f32 %v2018_v40, %v1876_v11  ;;  %1420 = vmatmul.f32.gmra.mxu1 %v2671_v16  ;;  %1636 = vmatmul.f32.gmra.mxu2 %v2673_v22 }
 0x2a6   : > { %v2132_v21 = vadd.f32 %v3763_v26, %v2092_v24  ;;  %1852 = vmatmul.f32.gmra.mxu3 %v2725_v6 }
 0x2a7   : > { %v1589_v30 = vpop.f32.mrf.mxu2  ;;  %v2021_v50 = vpop.f32.mrf.mxu0 }
 0x2a8   : > { %v2168_v10 = vmax.f32 %v2132_v21, 0.0  ;;  %v1661_v18 = vadd.f32 %v1589_v30, %v1445_v32 }
 0x2a9   : > { %v1376_v34 = vpop.f32.mrf.mxu1  ;;  %v1805_v45 = vpop.f32.mrf.mxu3 }
 0x2aa   : > { %2204 = vst [vmem:[%s3772_s25 + $0x88] sm:$0xff] %v2168_v10  ;;  %v1877_v28 = vadd.f32 %v1805_v45, %v1661_v18  ;;  %2068 = vmatmul.f32.gmra.mxu0 %v2777_v42  ;;  %v1446_v25 = vadd.f32 %v1376_v34, %v3658_v14 }
 0x2ac   : > { %v2093_v63 = vadd.f32 %v2021_v50, %v1877_v28  ;;  %1423 = vmatmul.f32.gmra.mxu1 %v2672_v62  ;;  %1639 = vmatmul.f32.gmra.mxu2 %v2674_v7 }
 0x2ae   : > { %v2133_v55 = vadd.f32 %v3763_v26, %v2093_v63  ;;  %1855 = vmatmul.f32.gmra.mxu3 %v2726_v49 }
 0x2af   : > { %v1592_v52 = vpop.f32.mrf.mxu2  ;;  %v2024_v16 = vpop.f32.mrf.mxu0 }
 0x2b0   : > { %v2169_v4 = vmax.f32 %v2133_v55, 0.0  ;;  %v1662_v51 = vadd.f32 %v1592_v52, %v1446_v25 }
 0x2b1   : > { %v1379_v54 = vpop.f32.mrf.mxu1  ;;  %v1808_v35 = vpop.f32.mrf.mxu3 }
 0x2b2   : > { %2205 = vst [vmem:[%s3772_s25 + $0x90] sm:$0xff] %v2169_v4  ;;  %v1878_v38 = vadd.f32 %v1808_v35, %v1662_v51  ;;  %2071 = vmatmul.f32.gmra.mxu0 %v2778_v43  ;;  %v1447_v56 = vadd.f32 %v1379_v54, %v3665_v39 }
 0x2b4   : > { %v2094_v0 = vadd.f32 %v2024_v16, %v1878_v38 }
 0x2b6   : > { %v2134_v53 = vadd.f32 %v3763_v26, %v2094_v0 }
 0x2b7   : > { %v1595_v14 = vpop.f32.mrf.mxu2  ;;  %v2027_v58 = vpop.f32.mrf.mxu0 }
 0x2b8   : > { %v2170_v29 = vmax.f32 %v2134_v53, 0.0  ;;  %v1663_v59 = vadd.f32 %v1595_v14, %v1447_v56 }
 0x2b9   : > { %v1382_v62 = vpop.f32.mrf.mxu1  ;;  %v1811_v47 = vpop.f32.mrf.mxu3 }
 0x2ba   : > { %2206 = vst [vmem:[%s3772_s25 + $0x98] sm:$0xff] %v2170_v29  ;;  %v1879_v44 = vadd.f32 %v1811_v47, %v1663_v59  ;;  %v1448_v31 = vadd.f32 %v1382_v62, %v3671_v5 }
 0x2bc   : > { %v2095_v20 = vadd.f32 %v2027_v58, %v1879_v44 }
 0x2be   : > { %v2135_v57 = vadd.f32 %v3763_v26, %v2095_v20 }
 0x2bf   : > { %v1598_v61 = vpop.f32.mrf.mxu2  ;;  %v2030_v40 = vpop.f32.mrf.mxu0 }
 0x2c0   : > { %v2171_v39 = vmax.f32 %v2135_v57, 0.0  ;;  %v1664_v9 = vadd.f32 %v1598_v61, %v1448_v31 }
 0x2c1   : > { %v1385_v36 = vpop.f32.mrf.mxu1  ;;  %v1814_v13 = vpop.f32.mrf.mxu3 }
 0x2c2   : > { %2207 = vst [vmem:[%s3772_s25 + $0xa0] sm:$0xff] %v2171_v39  ;;  %v1880_v41 = vadd.f32 %v1814_v13, %v1664_v9  ;;  %v1449_v22 = vadd.f32 %v1385_v36, %v3677_v23 }
 0x2c4   : > { %v2096_v2 = vadd.f32 %v2030_v40, %v1880_v41 }
 0x2c6   : > { %v2136_v11 = vadd.f32 %v3763_v26, %v2096_v2 }
 0x2c7   : > { %v1601_v6 = vpop.f32.mrf.mxu2  ;;  %v2033_v24 = vpop.f32.mrf.mxu0 }
 0x2c8   : > { %v2172_v5 = vmax.f32 %v2136_v11, 0.0  ;;  %v1665_v32 = vadd.f32 %v1601_v6, %v1449_v22 }
 0x2c9   : > { %v1388_v21 = vpop.f32.mrf.mxu1  ;;  %v1817_v30 = vpop.f32.mrf.mxu3 }
 0x2ca   : > { %2208 = vst [vmem:[%s3772_s25 + $0xa8] sm:$0xff] %v2172_v5  ;;  %v1881_v50 = vadd.f32 %v1817_v30, %v1665_v32  ;;  %v1450_v10 = vadd.f32 %v1388_v21, %v3683_v19 }
 0x2cc   : > { %v2097_v42 = vadd.f32 %v2033_v24, %v1881_v50 }
 0x2ce   : > { %v2137_v18 = vadd.f32 %v3763_v26, %v2097_v42 }
 0x2cf   : > { %v1604_v34 = vpop.f32.mrf.mxu2  ;;  %v2036_v45 = vpop.f32.mrf.mxu0 }
 0x2d0   : > { %v2173_v23 = vmax.f32 %v2137_v18, 0.0  ;;  %v1666_v7 = vadd.f32 %v1604_v34, %v1450_v10 }
 0x2d1   : > { %v1391_v28 = vpop.f32.mrf.mxu1  ;;  %v1820_v49 = vpop.f32.mrf.mxu3 }
 0x2d2   : > { %2209 = vst [vmem:[%s3772_s25 + $0xb0] sm:$0xff] %v2173_v23  ;;  %v1882_v63 = vadd.f32 %v1820_v49, %v1666_v7  ;;  %v1451_v55 = vadd.f32 %v1391_v28, %v3689_v27 }
 0x2d4   : > { %v2098_v25 = vadd.f32 %v2036_v45, %v1882_v63 }
 0x2d6   : > { %v2138_v52 = vadd.f32 %v3763_v26, %v2098_v25 }
 0x2d7   : > { %v1607_v16 = vpop.f32.mrf.mxu2  ;;  %v2039_v43 = vpop.f32.mrf.mxu0 }
 0x2d8   : > { %v2174_v19 = vmax.f32 %v2138_v52, 0.0  ;;  %v1667_v4 = vadd.f32 %v1607_v16, %v1451_v55 }
 0x2d9   : > { %v1394_v51 = vpop.f32.mrf.mxu1  ;;  %v1823_v54 = vpop.f32.mrf.mxu3 }
 0x2da   : > { %2210 = vst [vmem:[%s3772_s25 + $0xb8] sm:$0xff] %v2174_v19  ;;  %v1883_v35 = vadd.f32 %v1823_v54, %v1667_v4  ;;  %v1452_v0 = vadd.f32 %v1394_v51, %v3695_v8 }
 0x2dc   : > { %v2099_v38 = vadd.f32 %v2039_v43, %v1883_v35 }
 0x2de   : > { %v2139_v56 = vadd.f32 %v3763_v26, %v2099_v38 }
 0x2df   : > { %v1610_v53 = vpop.f32.mrf.mxu2  ;;  %v2042_v14 = vpop.f32.mrf.mxu0 }
 0x2e0   : > { %v2175_v27 = vmax.f32 %v2139_v56, 0.0  ;;  %v1668_v58 = vadd.f32 %v1610_v53, %v1452_v0 }
 0x2e1   : > { %v1397_v29 = vpop.f32.mrf.mxu1  ;;  %v1826_v59 = vpop.f32.mrf.mxu3 }
 0x2e2   : > { %2211 = vst [vmem:[%s3772_s25 + $0xc0] sm:$0xff] %v2175_v27  ;;  %v1884_v62 = vadd.f32 %v1826_v59, %v1668_v58  ;;  %v1453_v44 = vadd.f32 %v1397_v29, %v3701_v60 }
 0x2e4   : > { %v2100_v47 = vadd.f32 %v2042_v14, %v1884_v62 }
 0x2e6   : > { %v2140_v20 = vadd.f32 %v3763_v26, %v2100_v47 }
 0x2e7   : > { %v1613_v31 = vpop.f32.mrf.mxu2  ;;  %v2045_v57 = vpop.f32.mrf.mxu0 }
 0x2e8   : > { %v2176_v8 = vmax.f32 %v2140_v20, 0.0  ;;  %v1669_v61 = vadd.f32 %v1613_v31, %v1453_v44 }
 0x2e9   : > { %v1400_v40 = vpop.f32.mrf.mxu1  ;;  %v1829_v39 = vpop.f32.mrf.mxu3 }
 0x2ea   : > { %2212 = vst [vmem:[%s3772_s25 + $0xc8] sm:$0xff] %v2176_v8  ;;  %v1885_v9 = vadd.f32 %v1829_v39, %v1669_v61  ;;  %v1454_v13 = vadd.f32 %v1400_v40, %v3707_v12 }
 0x2ec   : > { %v2101_v36 = vadd.f32 %v2045_v57, %v1885_v9 }
 0x2ee   : > { %v2141_v41 = vadd.f32 %v3763_v26, %v2101_v36 }
 0x2ef   : > { %v1616_v2 = vpop.f32.mrf.mxu2  ;;  %v2048_v22 = vpop.f32.mrf.mxu0 }
 0x2f0   : > { %v2177_v60 = vmax.f32 %v2141_v41, 0.0  ;;  %v1670_v11 = vadd.f32 %v1616_v2, %v1454_v13 }
 0x2f1   : > { %v1403_v6 = vpop.f32.mrf.mxu1  ;;  %v1832_v24 = vpop.f32.mrf.mxu3 }
 0x2f2   : > { %2213 = vst [vmem:[%s3772_s25 + $0xd0] sm:$0xff] %v2177_v60  ;;  %v1886_v5 = vadd.f32 %v1832_v24, %v1670_v11  ;;  %v1455_v21 = vadd.f32 %v1403_v6, %v3713_v33 }
 0x2f4   : > { %v2102_v32 = vadd.f32 %v2048_v22, %v1886_v5 }
 0x2f6   : > { %v2142_v30 = vadd.f32 %v3763_v26, %v2102_v32 }
 0x2f7   : > { %v1619_v50 = vpop.f32.mrf.mxu2  ;;  %v2051_v42 = vpop.f32.mrf.mxu0 }
 0x2f8   : > { %v2178_v12 = vmax.f32 %v2142_v30, 0.0  ;;  %v1671_v10 = vadd.f32 %v1619_v50, %v1455_v21 }
 0x2f9   : > { %v1406_v18 = vpop.f32.mrf.mxu1  ;;  %v1835_v34 = vpop.f32.mrf.mxu3 }
 0x2fa   : > { %2214 = vst [vmem:[%s3772_s25 + $0xd8] sm:$0xff] %v2178_v12  ;;  %v1887_v45 = vadd.f32 %v1835_v34, %v1671_v10  ;;  %v1456_v7 = vadd.f32 %v1406_v18, %v3719_v1 }
 0x2fc   : > { %v2103_v23 = vadd.f32 %v2051_v42, %v1887_v45 }
 0x2fe   : > { %v2143_v28 = vadd.f32 %v3763_v26, %v2103_v23 }
 0x2ff   : > { %v1622_v49 = vpop.f32.mrf.mxu2  ;;  %v2054_v63 = vpop.f32.mrf.mxu0 }
 0x300   : > { %v2179_v33 = vmax.f32 %v2143_v28, 0.0  ;;  %v1672_v25 = vadd.f32 %v1622_v49, %v1456_v7  ;;  %v2872_v7 = vld [vmem:[%s3946_s2] ss:$0 sm:$0xff] }
 0x301   : > { %v1409_v55 = vpop.f32.mrf.mxu1  ;;  %v1838_v52 = vpop.f32.mrf.mxu3 }
 0x302   : > { %2215 = vst [vmem:[%s3772_s25 + $0xe0] sm:$0xff] %v2179_v33  ;;  %v1888_v16 = vadd.f32 %v1838_v52, %v1672_v25  ;;  %v1457_v19 = vadd.f32 %v1409_v55, %v3725_v15 }
 0x304   : > { %v2104_v43 = vadd.f32 %v2054_v63, %v1888_v16 }
 0x306   : > { %v2144_v4 = vadd.f32 %v3763_v26, %v2104_v43 }
 0x307   : > { %v1625_v51 = vpop.f32.mrf.mxu2  ;;  %v2057_v54 = vpop.f32.mrf.mxu0 }
 0x308   : > { %v2180_v1 = vmax.f32 %v2144_v4, 0.0  ;;  %v1673_v35 = vadd.f32 %v1625_v51, %v1457_v19 }
 0x309   : > { %v1412_v38 = vpop.f32.mrf.mxu1  ;;  %v1841_v0 = vpop.f32.mrf.mxu3 }
 0x30a   : > { %2216 = vst [vmem:[%s3772_s25 + $0xe8] sm:$0xff] %v2180_v1  ;;  %v1889_v56 = vadd.f32 %v1841_v0, %v1673_v35  ;;  %v1458_v14 = vadd.f32 %v1412_v38, %v3731_v46 }
 0x30c   : > { %v2105_v53 = vadd.f32 %v2057_v54, %v1889_v56 }
 0x30e   : > { %v2145_v27 = vadd.f32 %v3763_v26, %v2105_v53 }
 0x30f   : > { %v1628_v58 = vpop.f32.mrf.mxu2  ;;  %v2060_v29 = vpop.f32.mrf.mxu0 }
 0x310   : > { %v2181_v15 = vmax.f32 %v2145_v27, 0.0  ;;  %v1674_v59 = vadd.f32 %v1628_v58, %v1458_v14 }
 0x311   : > { %v1415_v62 = vpop.f32.mrf.mxu1  ;;  %v1844_v47 = vpop.f32.mrf.mxu3 }
 0x312   : > { %2217 = vst [vmem:[%s3772_s25 + $0xf0] sm:$0xff] %v2181_v15  ;;  %v1890_v44 = vadd.f32 %v1844_v47, %v1674_v59  ;;  %v1459_v31 = vadd.f32 %v1415_v62, %v3737_v48 }
 0x314   : > { %v2106_v20 = vadd.f32 %v2060_v29, %v1890_v44 }
 0x316   : > { %v2146_v57 = vadd.f32 %v3763_v26, %v2106_v20 }
 0x317   : > { %v1631_v8 = vpop.f32.mrf.mxu2  ;;  %v2063_v61 = vpop.f32.mrf.mxu0 }
 0x318   : > { %v2182_v46 = vmax.f32 %v2146_v57, 0.0  ;;  %v1675_v40 = vadd.f32 %v1631_v8, %v1459_v31 }
 0x319   : > { %v1418_v39 = vpop.f32.mrf.mxu1  ;;  %v1847_v9 = vpop.f32.mrf.mxu3 }
 0x31a   : > { %2218 = vst [vmem:[%s3772_s25 + $0xf8] sm:$0xff] %v2182_v46  ;;  %v1891_v36 = vadd.f32 %v1847_v9, %v1675_v40  ;;  %v1460_v41 = vadd.f32 %v1418_v39, %v3743_v3 }
 0x31c   : > { %v2107_v13 = vadd.f32 %v2063_v61, %v1891_v36 }
 0x31e   : > { %v2147_v2 = vadd.f32 %v3763_v26, %v2107_v13 }
 0x31f   : > { %v1634_v22 = vpop.f32.mrf.mxu2  ;;  %v2066_v60 = vpop.f32.mrf.mxu0 }
 0x320   : > { %v2183_v48 = vmax.f32 %v2147_v2, 0.0  ;;  %v1676_v11 = vadd.f32 %v1634_v22, %v1460_v41 }
 0x321   : > { %v1421_v6 = vpop.f32.mrf.mxu1  ;;  %v1850_v24 = vpop.f32.mrf.mxu3 }
 0x322   : > { %2219 = vst [vmem:[%s3772_s25 + $0x100] sm:$0xff] %v2183_v48  ;;  %v1892_v5 = vadd.f32 %v1850_v24, %v1676_v11  ;;  %v1461_v21 = vadd.f32 %v1421_v6, %v3749_v37 }
 0x324   : > { %v2108_v32 = vadd.f32 %v2066_v60, %v1892_v5 }
 0x326   : > { %v2148_v30 = vadd.f32 %v3763_v26, %v2108_v32 }
 0x327   : > { %v1637_v50 = vpop.f32.mrf.mxu2  ;;  %v2069_v42 = vpop.f32.mrf.mxu0 }
 0x328   : > { %v2184_v3 = vmax.f32 %v2148_v30, 0.0  ;;  %v1677_v12 = vadd.f32 %v1637_v50, %v1461_v21 }
 0x329   : > { %v1853_v10 = vpop.f32.mrf.mxu3  ;;  %v1424_v34 = vpop.f32.mrf.mxu1 }
 0x32a   : > { %2220 = vst [vmem:[%s3772_s25 + $0x108] sm:$0xff] %v2184_v3  ;;  %v1893_v18 = vadd.f32 %v1853_v10, %v1677_v12  ;;  %v1462_v23 = vadd.f32 %v1424_v34, %v3755_v17 }
 0x32c   : > { %v2109_v45 = vadd.f32 %v2069_v42, %v1893_v18 }
 0x32e   : > { %v2149_v37 = vadd.f32 %v2872_v7, %v2109_v45 }
 0x32f   : > { %v1640_v28 = vpop.f32.mrf.mxu2  ;;  %v2072_v33 = vpop.f32.mrf.mxu0 }
 0x330   : > { %v2185_v26 = vmax.f32 %v2149_v37, 0.0  ;;  %v1678_v49 = vadd.f32 %v1640_v28, %v1462_v23 }
 0x331   : > { %v1856_v63 = vpop.f32.mrf.mxu3 }
 0x332   : > { %2221 = vst [vmem:[%s3772_s25 + $0x110] sm:$0xff] %v2185_v26  ;;  %v1894_v25 = vadd.f32 %v1856_v63, %v1678_v49 }
 0x334   : > { %v2110_v55 = vadd.f32 %v2072_v33, %v1894_v25 }
 0x336   : > { %v2150_v52 = vadd.f32 %v2872_v7, %v2110_v55 }
 0x338   : > { %v2186_v16 = vmax.f32 %v2150_v52, 0.0 }
 0x33a   : > { %2222 = vst [vmem:[%s3772_s25 + $0x118] sm:$0xff] %v2186_v16 }
 0x33b PF: > { %s13_s14 = sadd.s32 1, %s2895_s14   ;;  %s3948_s12 = smov %s2891_s13 }
 0x33c   : > { %p10_p5 = scmp.ge.s32.totalorder %s13_s14, 4   ;;  %s3949_s13 = smov %s3951_s15 }
 0x33e   :  { %12 = sbr.rel (!%p10_p5) target bundleno = 2 (0x2), region = 85 }

</bundles_post_ra>
